<compile_context>
chip_gen: v7x
topology: tpu7x:2x2x1
jax: 0.10.0
libtpu: 0.0.40
codegen_flags: <defaults>
</compile_context>

<pallas_src>
import numpy as np
import jax
import jax.numpy as jnp
from jax.experimental import pallas as pl
from jax.experimental.pallas import tpu as pltpu


# ---------------------------------------------------------------------------
# Glue: grouped weights -> dense taps, BN folding, operator matrices.
# ---------------------------------------------------------------------------
def _expand_grouped_weight(w, groups):
    """PyTorch grouped conv weight (Cout, Cin_g, kh, kw) -> dense taps
    (kh, kw, Cin, Cout) with zeros outside the group blocks."""
    cout, cin_g, kh, kw = w.shape
    cin = cin_g * groups
    cout_g = cout // groups
    full = jnp.zeros((kh, kw, cin, cout), dtype=w.dtype)
    for g in range(groups):
        blk = w[g * cout_g:(g + 1) * cout_g]              # (Cout_g, Cin_g, kh, kw)
        blk = jnp.transpose(blk, (2, 3, 1, 0))            # (kh, kw, Cin_g, Cout_g)
        full = full.at[:, :, g * cin_g:(g + 1) * cin_g,
                             g * cout_g:(g + 1) * cout_g].set(blk)
    return full


def _folded_taps(p, eps=1e-5):
    """Zero-expanded taps with BN scale folded into the weights; folded bias."""
    w_dense = _expand_grouped_weight(p["w"], p["groups"])     # (kh, kw, Cin, Cout)
    scale = p["gamma"] / jnp.sqrt(p["var"] + eps)
    bias = p["beta"] + (p["b"] - p["mean"]) * scale
    return w_dense * scale, bias


def _row_operators(H):
    """G[dy]: (Hp,H) row-shift+embed for the unpadded input; A[dy]: (Hp,Hp) for
    already-padded intermediates. Both zero the border (padding) output rows."""
    Hp = H + 2
    G = np.zeros((3, Hp, H), np.float32)
    A = np.zeros((3, Hp, Hp), np.float32)
    for dy in range(3):
        for i in range(1, H + 1):
            p = i + dy - 2
            if 0 <= p < H:
                G[dy, i, p] = 1.0
            A[dy, i, i + dy - 1] = 1.0
    return jnp.asarray(G), jnp.asarray(A)


def _col_operator(w_taps, W, padded_input):
    """Column/channel operator per vertical tap: (3, Win*Cin, Wp*Cout).
    Applies the 3 horizontal taps, the channel contraction and the W zero-padding."""
    kh, kw, cin, cout = w_taps.shape
    Wp = W + 2
    Win = Wp if padded_input else W
    P = np.zeros((kw, Win, Wp), np.float32)
    for dx in range(kw):
        for j in range(1, W + 1):
            src = j + dx - 1 - (0 if padded_input else 1)
            if 0 <= src < Win:
                P[dx, src, j] = 1.0
    M = jnp.einsum('xsj,yxio->ysijo', jnp.asarray(P), w_taps)
    return M.reshape(kh, Win * cin, Wp * cout)


def _res_col_operator(w11, W):
    """1x1 residual conv as a (W*Cin, Wp*Cout) operator (into the padded layout)."""
    cin, cout = w11.shape
    Wp = W + 2
    P = np.zeros((W, Wp), np.float32)
    for j in range(1, W + 1):
        P[j - 1, j] = 1.0
    M = jnp.einsum('sj,io->sijo', jnp.asarray(P), w11)
    return M.reshape(W * cin, Wp * cout)


def _bias_embed(bias_vec, H, W):
    """Bias embedded only on interior pixels of the padded (Hp, Wp*Cout) layout."""
    Hp, Wp = H + 2, W + 2
    cout = bias_vec.shape[0]
    rmask = np.zeros((Hp,), np.float32); rmask[1:H + 1] = 1.0
    cmask = np.zeros((Wp,), np.float32); cmask[1:W + 1] = 1.0
    b = jnp.einsum('i,j,o->ijo', jnp.asarray(rmask), jnp.asarray(cmask), bias_vec)
    return b.reshape(Hp, Wp * cout)


def _pool_selectors(H, W, cout):
    """Row/column selection matrices for the 2x2 stride-2 max-pool."""
    Hp, Wp = H + 2, W + 2
    Ho, Wo = H // 2, W // 2
    SelT = np.zeros((Ho, Hp), np.float32)
    SelB = np.zeros((Ho, Hp), np.float32)
    for a in range(Ho):
        SelT[a, 2 * a + 1] = 1.0
        SelB[a, 2 * a + 2] = 1.0
    SelL = np.zeros((Wp * cout, Wo * cout), np.float32)
    SelR = np.zeros((Wp * cout, Wo * cout), np.float32)
    for b in range(Wo):
        for c in range(cout):
            SelL[(2 * b + 1) * cout + c, b * cout + c] = 1.0
            SelR[(2 * b + 2) * cout + c, b * cout + c] = 1.0
    return (jnp.asarray(SelT), jnp.asarray(SelB),
            jnp.asarray(SelL), jnp.asarray(SelR))


def build_operators(raw, H, W, eps=1e-5):
    w1, b1 = _folded_taps(raw["c1"], eps)
    w2, b2 = _folded_taps(raw["c2"], eps)
    w3, b3 = _folded_taps(raw["c3"], eps)
    wr, br = _folded_taps(raw["cr"], eps)
    cout = w1.shape[-1]
    G, A = _row_operators(H)
    ops = dict(
        cout=cout,
        g=G, a=A,
        m1=_col_operator(w1, W, padded_input=False),
        m2=_col_operator(w2, W, padded_input=True),
        m3=_col_operator(w3, W, padded_input=True),
        mr=_res_col_operator(wr[0, 0], W),
        bias=jnp.stack([_bias_embed(b, H, W) for b in (b1, b2, b3, br)], axis=0),
    )
    selt, selb, sell, selr = _pool_selectors(H, W, cout)
    ops.update(selt=selt, selb=selb, sell=sell, selr=selr)
    return ops


# ---------------------------------------------------------------------------
# Fused kernel: conv1/2/3 (+BN+ReLU) + 1x1 residual + add + ReLU + 2x2 max-pool.
# Activations live as (Hp, Wp*C) lane-dense slabs; every structural op (padding,
# tap shifts, pool selection) is a precomputed matmul -> only VMEM-friendly ops.
# ---------------------------------------------------------------------------
def _fused_sepres_kernel(xf_ref, g_ref, a_ref, m1_ref, m2_ref, m3_ref, mr_ref,
                         bias_ref, selt_ref, selb_ref, sell_ref, selr_ref, o_ref):
    def mm(a, b):
        return jnp.dot(a, b, preferred_element_type=jnp.float32)

    xf = xf_ref[0]                                        # (H, W*Cin)

    # Row-shifted, H-zero-padded copies of the input (one per vertical tap).
    # xs[1] (the unshifted embedding) is reused by the 1x1 residual branch.
    xs = [mm(g_ref[dy], xf) for dy in range(3)]           # each (Hp, W*Cin)

    # conv1 + BN + ReLU (BN scale folded into m1, bias pre-embedded in padded layout)
    h = bias_ref[0]
    for dy in range(3):
        h = h + mm(xs[dy], m1_ref[dy])
    h = jnp.maximum(h, 0.0)                               # (Hp, Wp*Cout)

    # conv2 + BN + ReLU
    h2 = bias_ref[1]
    for dy in range(3):
        h2 = h2 + mm(mm(a_ref[dy], h), m2_ref[dy])
    h2 = jnp.maximum(h2, 0.0)

    # conv3 + BN (no ReLU)
    h3 = bias_ref[2]
    for dy in range(3):
        h3 = h3 + mm(mm(a_ref[dy], h2), m3_ref[dy])

    # 1x1 residual conv + BN
    r = bias_ref[3] + mm(xs[1], mr_ref[...])

    # residual add + ReLU, then 2x2 stride-2 max-pool via selection matmuls
    s = jnp.maximum(h3 + r, 0.0)                          # (Hp, Wp*Cout)
    rows = jnp.maximum(mm(selt_ref[...], s), mm(selb_ref[...], s))        # (Ho, Wp*Cout)
    pooled = jnp.maximum(mm(rows, sell_ref[...]), mm(rows, selr_ref[...]))  # (Ho, Wo*Cout)
    o_ref[0] = pooled.astype(o_ref.dtype)


def _const_index_map(ndim):
    zeros = (0,) * ndim
    return lambda n: zeros


def sepres_block(x_nchw, ops):
    N, Cin, H, W = x_nchw.shape
    Cout = ops["cout"]
    Ho, Wo = H // 2, W // 2

    # NCHW -> lane-dense (N, H, W*Cin); no explicit padding pass (handled in-kernel).
    xf = jnp.transpose(x_nchw, (0, 2, 3, 1)).reshape(N, H, W * Cin)

    weight_ops = (ops["g"], ops["a"], ops["m1"], ops["m2"], ops["m3"], ops["mr"],
                  ops["bias"], ops["selt"], ops["selb"], ops["sell"], ops["selr"])

    in_specs = [pl.BlockSpec((1, H, W * Cin), lambda n: (n, 0, 0))]
    in_specs += [pl.BlockSpec(op.shape, _const_index_map(op.ndim)) for op in weight_ops]

    out = pl.pallas_call(
        _fused_sepres_kernel,
        out_shape=jax.ShapeDtypeStruct((N, Ho, Wo * Cout), x_nchw.dtype),
        grid=(N,),
        in_specs=in_specs,
        out_specs=pl.BlockSpec((1, Ho, Wo * Cout), lambda n: (n, 0, 0)),
        compiler_params=pltpu.CompilerParams(dimension_semantics=("parallel",)),
    )(xf, *weight_ops)

    y = out.reshape(N, Ho, Wo, Cout)
    return jnp.transpose(y, (0, 3, 1, 2))                 # NHWC -> NCHW


# ---------------------------------------------------------------------------
# Raw (PyTorch-like) parameters and a pure-JAX reference for validation.
# ---------------------------------------------------------------------------
def init_params(key, cin, cout, groups):
    keys = iter(jax.random.split(key, 24))

    def conv_bn(c_in, k):
        return dict(
            w=0.2 * jax.random.normal(next(keys), (cout, c_in // groups, k, k), jnp.float32),
            b=0.1 * jax.random.normal(next(keys), (cout,), jnp.float32),
            gamma=1.0 + 0.1 * jax.random.normal(next(keys), (cout,), jnp.float32),
            beta=0.1 * jax.random.normal(next(keys), (cout,), jnp.float32),
            mean=0.1 * jax.random.normal(next(keys), (cout,), jnp.float32),
            var=0.5 + jax.random.uniform(next(keys), (cout,), jnp.float32),
            groups=groups)

    return dict(c1=conv_bn(cin, 3), c2=conv_bn(cout, 3), c3=conv_bn(cout, 3),
                cr=conv_bn(cin, 1))


def _reference(x, raw, eps=1e-5):
    def conv_bn(h, p, k, relu):
        y = jax.lax.conv_general_dilated(
            h, p["w"], window_strides=(1, 1), padding=[(k // 2, k // 2)] * 2,
            dimension_numbers=("NCHW", "OIHW", "NCHW"),
            feature_group_count=p["groups"],
            precision=jax.lax.Precision.HIGHEST)
        scale = (p["gamma"] / jnp.sqrt(p["var"] + eps))[None, :, None, None]
        y = (y + p["b"][None, :, None, None] - p["mean"][None, :, None, None]) * scale \
            + p["beta"][None, :, None, None]
        return jnp.maximum(y, 0.0) if relu else y

    out = conv_bn(x, raw["c1"], 3, True)
    out = conv_bn(out, raw["c2"], 3, True)
    out = conv_bn(out, raw["c3"], 3, False)
    res = conv_bn(x, raw["cr"], 1, False)
    s = jnp.maximum(out + res, 0.0)
    return jax.lax.reduce_window(s, -jnp.inf, jax.lax.max,
                                 (1, 1, 2, 2), (1, 1, 2, 2), "VALID")


if __name__ == "__main__":
    key = jax.random.PRNGKey(0)
    kx, kp = jax.random.split(key)
    N, Cin, Cout, H, W, G = 2, 6, 6, 16, 16, 3   # channels divisible by group_num=3
    x = jax.random.normal(kx, (N, Cin, H, W), jnp.float32)   # NCHW, like PyTorch

    raw = init_params(kp, Cin, Cout, G)
    ops = build_operators(raw, H, W)

    y = sepres_block(x, ops)
    jax.block_until_ready(y)
    assert y.shape == (N, Cout, H // 2, W // 2) and y.dtype == jnp.float32

    y_ref = _reference(x, raw)
    err = float(jnp.max(jnp.abs(y - y_ref)))
    assert err < 5e-2, f"mismatch vs reference: {err}"
    print("KERNEL_OK")
</pallas_src>

<mosaic_0001>
module attributes {stable_mosaic.version = 11 : i64} {
  func.func @_fused_sepres_kernel(%arg0: i32, %arg1: memref<1x16x96xf32, #tpu.memory_space<vmem>>, %arg2: memref<3x18x16xf32, #tpu.memory_space<vmem>>, %arg3: memref<3x18x18xf32, #tpu.memory_space<vmem>>, %arg4: memref<3x96x108xf32, #tpu.memory_space<vmem>>, %arg5: memref<3x108x108xf32, #tpu.memory_space<vmem>>, %arg6: memref<3x108x108xf32, #tpu.memory_space<vmem>>, %arg7: memref<96x108xf32, #tpu.memory_space<vmem>>, %arg8: memref<4x18x108xf32, #tpu.memory_space<vmem>>, %arg9: memref<8x18xf32, #tpu.memory_space<vmem>>, %arg10: memref<8x18xf32, #tpu.memory_space<vmem>>, %arg11: memref<108x48xf32, #tpu.memory_space<vmem>>, %arg12: memref<108x48xf32, #tpu.memory_space<vmem>>, %arg13: memref<1x8x48xf32, #tpu.memory_space<vmem>>) attributes {dimension_semantics = [#tpu.dimension_semantics<parallel>], iteration_bounds = array<i64: 2>, scalar_prefetch = 0 : i64, scratch_operands = 0 : i64, tpu.core_type = #tpu.core_type<tc>, window_params = [{transform_indices = @transform_0, window_bounds = array<i64: 1, 16, 96>}, {pipeline_mode = #tpu.pipeline_mode<synchronous>, transform_indices = @transform_1, window_bounds = array<i64: 3, 18, 16>}, {pipeline_mode = #tpu.pipeline_mode<synchronous>, transform_indices = @transform_2, window_bounds = array<i64: 3, 18, 18>}, {pipeline_mode = #tpu.pipeline_mode<synchronous>, transform_indices = @transform_3, window_bounds = array<i64: 3, 96, 108>}, {pipeline_mode = #tpu.pipeline_mode<synchronous>, transform_indices = @transform_4, window_bounds = array<i64: 3, 108, 108>}, {pipeline_mode = #tpu.pipeline_mode<synchronous>, transform_indices = @transform_5, window_bounds = array<i64: 3, 108, 108>}, {pipeline_mode = #tpu.pipeline_mode<synchronous>, transform_indices = @transform_6, window_bounds = array<i64: 96, 108>}, {pipeline_mode = #tpu.pipeline_mode<synchronous>, transform_indices = @transform_7, window_bounds = array<i64: 4, 18, 108>}, {pipeline_mode = #tpu.pipeline_mode<synchronous>, transform_indices = @transform_8, window_bounds = array<i64: 8, 18>}, {pipeline_mode = #tpu.pipeline_mode<synchronous>, transform_indices = @transform_9, window_bounds = array<i64: 8, 18>}, {pipeline_mode = #tpu.pipeline_mode<synchronous>, transform_indices = @transform_10, window_bounds = array<i64: 108, 48>}, {pipeline_mode = #tpu.pipeline_mode<synchronous>, transform_indices = @transform_11, window_bounds = array<i64: 108, 48>}, {transform_indices = @transform_12, window_bounds = array<i64: 1, 8, 48>}]} {
    %c0 = arith.constant 0 : index
    %c0_0 = arith.constant 0 : index
    %c0_1 = arith.constant 0 : index
    %0 = vector.load %arg1[%c0, %c0_0, %c0_1] : memref<1x16x96xf32, #tpu.memory_space<vmem>>, vector<1x16x96xf32>
    %1 = vector.shape_cast %0 : vector<1x16x96xf32> to vector<16x96xf32>
    %c0_2 = arith.constant 0 : index
    %c0_3 = arith.constant 0 : index
    %c0_4 = arith.constant 0 : index
    %2 = vector.load %arg2[%c0_2, %c0_3, %c0_4] : memref<3x18x16xf32, #tpu.memory_space<vmem>>, vector<1x18x16xf32>
    %3 = vector.shape_cast %2 : vector<1x18x16xf32> to vector<18x16xf32>
    %cst = arith.constant dense<0.000000e+00> : vector<18x96xf32>
    %4 = tpu.matmul %3, %1, %cst {dimension_numbers = #tpu.dot_dimension_numbers<[1], [0], [0], [1], [0, 0, 1, 1], [], []>} : vector<18x16xf32>, vector<16x96xf32>, vector<18x96xf32> -> vector<18x96xf32>
    %c1 = arith.constant 1 : index
    %c0_5 = arith.constant 0 : index
    %c0_6 = arith.constant 0 : index
    %5 = vector.load %arg2[%c1, %c0_5, %c0_6] : memref<3x18x16xf32, #tpu.memory_space<vmem>>, vector<1x18x16xf32>
    %6 = vector.shape_cast %5 : vector<1x18x16xf32> to vector<18x16xf32>
    %cst_7 = arith.constant dense<0.000000e+00> : vector<18x96xf32>
    %7 = tpu.matmul %6, %1, %cst_7 {dimension_numbers = #tpu.dot_dimension_numbers<[1], [0], [0], [1], [0, 0, 1, 1], [], []>} : vector<18x16xf32>, vector<16x96xf32>, vector<18x96xf32> -> vector<18x96xf32>
    %c2 = arith.constant 2 : index
    %c0_8 = arith.constant 0 : index
    %c0_9 = arith.constant 0 : index
    %8 = vector.load %arg2[%c2, %c0_8, %c0_9] : memref<3x18x16xf32, #tpu.memory_space<vmem>>, vector<1x18x16xf32>
    %9 = vector.shape_cast %8 : vector<1x18x16xf32> to vector<18x16xf32>
    %cst_10 = arith.constant dense<0.000000e+00> : vector<18x96xf32>
    %10 = tpu.matmul %9, %1, %cst_10 {dimension_numbers = #tpu.dot_dimension_numbers<[1], [0], [0], [1], [0, 0, 1, 1], [], []>} : vector<18x16xf32>, vector<16x96xf32>, vector<18x96xf32> -> vector<18x96xf32>
    %c0_11 = arith.constant 0 : index
    %c0_12 = arith.constant 0 : index
    %c0_13 = arith.constant 0 : index
    %11 = vector.load %arg8[%c0_11, %c0_12, %c0_13] : memref<4x18x108xf32, #tpu.memory_space<vmem>>, vector<1x18x108xf32>
    %12 = vector.shape_cast %11 : vector<1x18x108xf32> to vector<18x108xf32>
    %c0_14 = arith.constant 0 : index
    %c0_15 = arith.constant 0 : index
    %c0_16 = arith.constant 0 : index
    %13 = vector.load %arg4[%c0_14, %c0_15, %c0_16] : memref<3x96x108xf32, #tpu.memory_space<vmem>>, vector<1x96x108xf32>
    %14 = vector.shape_cast %13 : vector<1x96x108xf32> to vector<96x108xf32>
    %cst_17 = arith.constant dense<0.000000e+00> : vector<18x108xf32>
    %15 = tpu.matmul %4, %14, %cst_17 {dimension_numbers = #tpu.dot_dimension_numbers<[1], [0], [0], [1], [0, 0, 1, 1], [], []>} : vector<18x96xf32>, vector<96x108xf32>, vector<18x108xf32> -> vector<18x108xf32>
    %16 = arith.addf %12, %15 : vector<18x108xf32>
    %c1_18 = arith.constant 1 : index
    %c0_19 = arith.constant 0 : index
    %c0_20 = arith.constant 0 : index
    %17 = vector.load %arg4[%c1_18, %c0_19, %c0_20] : memref<3x96x108xf32, #tpu.memory_space<vmem>>, vector<1x96x108xf32>
    %18 = vector.shape_cast %17 : vector<1x96x108xf32> to vector<96x108xf32>
    %cst_21 = arith.constant dense<0.000000e+00> : vector<18x108xf32>
    %19 = tpu.matmul %7, %18, %cst_21 {dimension_numbers = #tpu.dot_dimension_numbers<[1], [0], [0], [1], [0, 0, 1, 1], [], []>} : vector<18x96xf32>, vector<96x108xf32>, vector<18x108xf32> -> vector<18x108xf32>
    %20 = arith.addf %16, %19 : vector<18x108xf32>
    %c2_22 = arith.constant 2 : index
    %c0_23 = arith.constant 0 : index
    %c0_24 = arith.constant 0 : index
    %21 = vector.load %arg4[%c2_22, %c0_23, %c0_24] : memref<3x96x108xf32, #tpu.memory_space<vmem>>, vector<1x96x108xf32>
    %22 = vector.shape_cast %21 : vector<1x96x108xf32> to vector<96x108xf32>
    %cst_25 = arith.constant dense<0.000000e+00> : vector<18x108xf32>
    %23 = tpu.matmul %10, %22, %cst_25 {dimension_numbers = #tpu.dot_dimension_numbers<[1], [0], [0], [1], [0, 0, 1, 1], [], []>} : vector<18x96xf32>, vector<96x108xf32>, vector<18x108xf32> -> vector<18x108xf32>
    %24 = arith.addf %20, %23 : vector<18x108xf32>
    %cst_26 = arith.constant 0.000000e+00 : f32
    %25 = vector.broadcast %cst_26 : f32 to vector<18x108xf32>
    %26 = arith.maximumf %24, %25 : vector<18x108xf32>
    %c1_27 = arith.constant 1 : index
    %c0_28 = arith.constant 0 : index
    %c0_29 = arith.constant 0 : index
    %27 = vector.load %arg8[%c1_27, %c0_28, %c0_29] : memref<4x18x108xf32, #tpu.memory_space<vmem>>, vector<1x18x108xf32>
    %28 = vector.shape_cast %27 : vector<1x18x108xf32> to vector<18x108xf32>
    %c0_30 = arith.constant 0 : index
    %c0_31 = arith.constant 0 : index
    %c0_32 = arith.constant 0 : index
    %29 = vector.load %arg3[%c0_30, %c0_31, %c0_32] : memref<3x18x18xf32, #tpu.memory_space<vmem>>, vector<1x18x18xf32>
    %30 = vector.shape_cast %29 : vector<1x18x18xf32> to vector<18x18xf32>
    %cst_33 = arith.constant dense<0.000000e+00> : vector<18x108xf32>
    %31 = tpu.matmul %30, %26, %cst_33 {dimension_numbers = #tpu.dot_dimension_numbers<[1], [0], [0], [1], [0, 0, 1, 1], [], []>} : vector<18x18xf32>, vector<18x108xf32>, vector<18x108xf32> -> vector<18x108xf32>
    %c0_34 = arith.constant 0 : index
    %c0_35 = arith.constant 0 : index
    %c0_36 = arith.constant 0 : index
    %32 = vector.load %arg5[%c0_34, %c0_35, %c0_36] : memref<3x108x108xf32, #tpu.memory_space<vmem>>, vector<1x108x108xf32>
    %33 = vector.shape_cast %32 : vector<1x108x108xf32> to vector<108x108xf32>
    %cst_37 = arith.constant dense<0.000000e+00> : vector<18x108xf32>
    %34 = tpu.matmul %31, %33, %cst_37 {dimension_numbers = #tpu.dot_dimension_numbers<[1], [0], [0], [1], [0, 0, 1, 1], [], []>} : vector<18x108xf32>, vector<108x108xf32>, vector<18x108xf32> -> vector<18x108xf32>
    %35 = arith.addf %28, %34 : vector<18x108xf32>
    %c1_38 = arith.constant 1 : index
    %c0_39 = arith.constant 0 : index
    %c0_40 = arith.constant 0 : index
    %36 = vector.load %arg3[%c1_38, %c0_39, %c0_40] : memref<3x18x18xf32, #tpu.memory_space<vmem>>, vector<1x18x18xf32>
    %37 = vector.shape_cast %36 : vector<1x18x18xf32> to vector<18x18xf32>
    %cst_41 = arith.constant dense<0.000000e+00> : vector<18x108xf32>
    %38 = tpu.matmul %37, %26, %cst_41 {dimension_numbers = #tpu.dot_dimension_numbers<[1], [0], [0], [1], [0, 0, 1, 1], [], []>} : vector<18x18xf32>, vector<18x108xf32>, vector<18x108xf32> -> vector<18x108xf32>
    %c1_42 = arith.constant 1 : index
    %c0_43 = arith.constant 0 : index
    %c0_44 = arith.constant 0 : index
    %39 = vector.load %arg5[%c1_42, %c0_43, %c0_44] : memref<3x108x108xf32, #tpu.memory_space<vmem>>, vector<1x108x108xf32>
    %40 = vector.shape_cast %39 : vector<1x108x108xf32> to vector<108x108xf32>
    %cst_45 = arith.constant dense<0.000000e+00> : vector<18x108xf32>
    %41 = tpu.matmul %38, %40, %cst_45 {dimension_numbers = #tpu.dot_dimension_numbers<[1], [0], [0], [1], [0, 0, 1, 1], [], []>} : vector<18x108xf32>, vector<108x108xf32>, vector<18x108xf32> -> vector<18x108xf32>
    %42 = arith.addf %35, %41 : vector<18x108xf32>
    %c2_46 = arith.constant 2 : index
    %c0_47 = arith.constant 0 : index
    %c0_48 = arith.constant 0 : index
    %43 = vector.load %arg3[%c2_46, %c0_47, %c0_48] : memref<3x18x18xf32, #tpu.memory_space<vmem>>, vector<1x18x18xf32>
    %44 = vector.shape_cast %43 : vector<1x18x18xf32> to vector<18x18xf32>
    %cst_49 = arith.constant dense<0.000000e+00> : vector<18x108xf32>
    %45 = tpu.matmul %44, %26, %cst_49 {dimension_numbers = #tpu.dot_dimension_numbers<[1], [0], [0], [1], [0, 0, 1, 1], [], []>} : vector<18x18xf32>, vector<18x108xf32>, vector<18x108xf32> -> vector<18x108xf32>
    %c2_50 = arith.constant 2 : index
    %c0_51 = arith.constant 0 : index
    %c0_52 = arith.constant 0 : index
    %46 = vector.load %arg5[%c2_50, %c0_51, %c0_52] : memref<3x108x108xf32, #tpu.memory_space<vmem>>, vector<1x108x108xf32>
    %47 = vector.shape_cast %46 : vector<1x108x108xf32> to vector<108x108xf32>
    %cst_53 = arith.constant dense<0.000000e+00> : vector<18x108xf32>
    %48 = tpu.matmul %45, %47, %cst_53 {dimension_numbers = #tpu.dot_dimension_numbers<[1], [0], [0], [1], [0, 0, 1, 1], [], []>} : vector<18x108xf32>, vector<108x108xf32>, vector<18x108xf32> -> vector<18x108xf32>
    %49 = arith.addf %42, %48 : vector<18x108xf32>
    %cst_54 = arith.constant 0.000000e+00 : f32
    %50 = vector.broadcast %cst_54 : f32 to vector<18x108xf32>
    %51 = arith.maximumf %49, %50 : vector<18x108xf32>
    %c2_55 = arith.constant 2 : index
    %c0_56 = arith.constant 0 : index
    %c0_57 = arith.constant 0 : index
    %52 = vector.load %arg8[%c2_55, %c0_56, %c0_57] : memref<4x18x108xf32, #tpu.memory_space<vmem>>, vector<1x18x108xf32>
    %53 = vector.shape_cast %52 : vector<1x18x108xf32> to vector<18x108xf32>
    %c0_58 = arith.constant 0 : index
    %c0_59 = arith.constant 0 : index
    %c0_60 = arith.constant 0 : index
    %54 = vector.load %arg3[%c0_58, %c0_59, %c0_60] : memref<3x18x18xf32, #tpu.memory_space<vmem>>, vector<1x18x18xf32>
    %55 = vector.shape_cast %54 : vector<1x18x18xf32> to vector<18x18xf32>
    %cst_61 = arith.constant dense<0.000000e+00> : vector<18x108xf32>
    %56 = tpu.matmul %55, %51, %cst_61 {dimension_numbers = #tpu.dot_dimension_numbers<[1], [0], [0], [1], [0, 0, 1, 1], [], []>} : vector<18x18xf32>, vector<18x108xf32>, vector<18x108xf32> -> vector<18x108xf32>
    %c0_62 = arith.constant 0 : index
    %c0_63 = arith.constant 0 : index
    %c0_64 = arith.constant 0 : index
    %57 = vector.load %arg6[%c0_62, %c0_63, %c0_64] : memref<3x108x108xf32, #tpu.memory_space<vmem>>, vector<1x108x108xf32>
    %58 = vector.shape_cast %57 : vector<1x108x108xf32> to vector<108x108xf32>
    %cst_65 = arith.constant dense<0.000000e+00> : vector<18x108xf32>
    %59 = tpu.matmul %56, %58, %cst_65 {dimension_numbers = #tpu.dot_dimension_numbers<[1], [0], [0], [1], [0, 0, 1, 1], [], []>} : vector<18x108xf32>, vector<108x108xf32>, vector<18x108xf32> -> vector<18x108xf32>
    %60 = arith.addf %53, %59 : vector<18x108xf32>
    %c1_66 = arith.constant 1 : index
    %c0_67 = arith.constant 0 : index
    %c0_68 = arith.constant 0 : index
    %61 = vector.load %arg3[%c1_66, %c0_67, %c0_68] : memref<3x18x18xf32, #tpu.memory_space<vmem>>, vector<1x18x18xf32>
    %62 = vector.shape_cast %61 : vector<1x18x18xf32> to vector<18x18xf32>
    %cst_69 = arith.constant dense<0.000000e+00> : vector<18x108xf32>
    %63 = tpu.matmul %62, %51, %cst_69 {dimension_numbers = #tpu.dot_dimension_numbers<[1], [0], [0], [1], [0, 0, 1, 1], [], []>} : vector<18x18xf32>, vector<18x108xf32>, vector<18x108xf32> -> vector<18x108xf32>
    %c1_70 = arith.constant 1 : index
    %c0_71 = arith.constant 0 : index
    %c0_72 = arith.constant 0 : index
    %64 = vector.load %arg6[%c1_70, %c0_71, %c0_72] : memref<3x108x108xf32, #tpu.memory_space<vmem>>, vector<1x108x108xf32>
    %65 = vector.shape_cast %64 : vector<1x108x108xf32> to vector<108x108xf32>
    %cst_73 = arith.constant dense<0.000000e+00> : vector<18x108xf32>
    %66 = tpu.matmul %63, %65, %cst_73 {dimension_numbers = #tpu.dot_dimension_numbers<[1], [0], [0], [1], [0, 0, 1, 1], [], []>} : vector<18x108xf32>, vector<108x108xf32>, vector<18x108xf32> -> vector<18x108xf32>
    %67 = arith.addf %60, %66 : vector<18x108xf32>
    %c2_74 = arith.constant 2 : index
    %c0_75 = arith.constant 0 : index
    %c0_76 = arith.constant 0 : index
    %68 = vector.load %arg3[%c2_74, %c0_75, %c0_76] : memref<3x18x18xf32, #tpu.memory_space<vmem>>, vector<1x18x18xf32>
    %69 = vector.shape_cast %68 : vector<1x18x18xf32> to vector<18x18xf32>
    %cst_77 = arith.constant dense<0.000000e+00> : vector<18x108xf32>
    %70 = tpu.matmul %69, %51, %cst_77 {dimension_numbers = #tpu.dot_dimension_numbers<[1], [0], [0], [1], [0, 0, 1, 1], [], []>} : vector<18x18xf32>, vector<18x108xf32>, vector<18x108xf32> -> vector<18x108xf32>
    %c2_78 = arith.constant 2 : index
    %c0_79 = arith.constant 0 : index
    %c0_80 = arith.constant 0 : index
    %71 = vector.load %arg6[%c2_78, %c0_79, %c0_80] : memref<3x108x108xf32, #tpu.memory_space<vmem>>, vector<1x108x108xf32>
    %72 = vector.shape_cast %71 : vector<1x108x108xf32> to vector<108x108xf32>
    %cst_81 = arith.constant dense<0.000000e+00> : vector<18x108xf32>
    %73 = tpu.matmul %70, %72, %cst_81 {dimension_numbers = #tpu.dot_dimension_numbers<[1], [0], [0], [1], [0, 0, 1, 1], [], []>} : vector<18x108xf32>, vector<108x108xf32>, vector<18x108xf32> -> vector<18x108xf32>
    %74 = arith.addf %67, %73 : vector<18x108xf32>
    %c3 = arith.constant 3 : index
    %c0_82 = arith.constant 0 : index
    %c0_83 = arith.constant 0 : index
    %75 = vector.load %arg8[%c3, %c0_82, %c0_83] : memref<4x18x108xf32, #tpu.memory_space<vmem>>, vector<1x18x108xf32>
    %76 = vector.shape_cast %75 : vector<1x18x108xf32> to vector<18x108xf32>
    %c0_84 = arith.constant 0 : index
    %c0_85 = arith.constant 0 : index
    %77 = vector.load %arg7[%c0_84, %c0_85] : memref<96x108xf32, #tpu.memory_space<vmem>>, vector<96x108xf32>
    %cst_86 = arith.constant dense<0.000000e+00> : vector<18x108xf32>
    %78 = tpu.matmul %7, %77, %cst_86 {dimension_numbers = #tpu.dot_dimension_numbers<[1], [0], [0], [1], [0, 0, 1, 1], [], []>} : vector<18x96xf32>, vector<96x108xf32>, vector<18x108xf32> -> vector<18x108xf32>
    %79 = arith.addf %76, %78 : vector<18x108xf32>
    %80 = arith.addf %74, %79 : vector<18x108xf32>
    %cst_87 = arith.constant 0.000000e+00 : f32
    %81 = vector.broadcast %cst_87 : f32 to vector<18x108xf32>
    %82 = arith.maximumf %80, %81 : vector<18x108xf32>
    %c0_88 = arith.constant 0 : index
    %c0_89 = arith.constant 0 : index
    %83 = vector.load %arg9[%c0_88, %c0_89] : memref<8x18xf32, #tpu.memory_space<vmem>>, vector<8x18xf32>
    %cst_90 = arith.constant dense<0.000000e+00> : vector<8x108xf32>
    %84 = tpu.matmul %83, %82, %cst_90 {dimension_numbers = #tpu.dot_dimension_numbers<[1], [0], [0], [1], [0, 0, 1, 1], [], []>} : vector<8x18xf32>, vector<18x108xf32>, vector<8x108xf32> -> vector<8x108xf32>
    %c0_91 = arith.constant 0 : index
    %c0_92 = arith.constant 0 : index
    %85 = vector.load %arg10[%c0_91, %c0_92] : memref<8x18xf32, #tpu.memory_space<vmem>>, vector<8x18xf32>
    %cst_93 = arith.constant dense<0.000000e+00> : vector<8x108xf32>
    %86 = tpu.matmul %85, %82, %cst_93 {dimension_numbers = #tpu.dot_dimension_numbers<[1], [0], [0], [1], [0, 0, 1, 1], [], []>} : vector<8x18xf32>, vector<18x108xf32>, vector<8x108xf32> -> vector<8x108xf32>
    %87 = arith.maximumf %84, %86 : vector<8x108xf32>
    %c0_94 = arith.constant 0 : index
    %c0_95 = arith.constant 0 : index
    %88 = vector.load %arg11[%c0_94, %c0_95] : memref<108x48xf32, #tpu.memory_space<vmem>>, vector<108x48xf32>
    %cst_96 = arith.constant dense<0.000000e+00> : vector<8x48xf32>
    %89 = tpu.matmul %87, %88, %cst_96 {dimension_numbers = #tpu.dot_dimension_numbers<[1], [0], [0], [1], [0, 0, 1, 1], [], []>} : vector<8x108xf32>, vector<108x48xf32>, vector<8x48xf32> -> vector<8x48xf32>
    %c0_97 = arith.constant 0 : index
    %c0_98 = arith.constant 0 : index
    %90 = vector.load %arg12[%c0_97, %c0_98] : memref<108x48xf32, #tpu.memory_space<vmem>>, vector<108x48xf32>
    %cst_99 = arith.constant dense<0.000000e+00> : vector<8x48xf32>
    %91 = tpu.matmul %87, %90, %cst_99 {dimension_numbers = #tpu.dot_dimension_numbers<[1], [0], [0], [1], [0, 0, 1, 1], [], []>} : vector<8x108xf32>, vector<108x48xf32>, vector<8x48xf32> -> vector<8x48xf32>
    %92 = arith.maximumf %89, %91 : vector<8x48xf32>
    %c0_100 = arith.constant 0 : index
    %c0_101 = arith.constant 0 : index
    %c0_102 = arith.constant 0 : index
    %93 = vector.load %arg13[%c0_100, %c0_101, %c0_102] : memref<1x8x48xf32, #tpu.memory_space<vmem>>, vector<1x8x48xf32>
    %94 = vector.shape_cast %93 : vector<1x8x48xf32> to vector<8x48xf32>
    %95 = vector.shape_cast %92 : vector<8x48xf32> to vector<1x8x48xf32>
    tpu.vector_store %arg13[%c0_100, %c0_101, %c0_102], %95 {strides = array<i32>} : memref<1x8x48xf32, #tpu.memory_space<vmem>>, vector<1x8x48xf32>,
    return
  }
  func.func @transform_0(%arg0: i32) -> (i32, i32, i32) {
    %c0_i32 = arith.constant 0 : i32
    %c0_i32_0 = arith.constant 0 : i32
    %c0_i32_1 = arith.constant 0 : i32
    return %arg0, %c0_i32, %c0_i32_0 : i32, i32, i32
  }
  func.func @transform_1(%arg0: i32) -> (i32, i32, i32) {
    %c0_i32 = arith.constant 0 : i32
    %c0_i32_0 = arith.constant 0 : i32
    %c0_i32_1 = arith.constant 0 : i32
    %c0_i32_2 = arith.constant 0 : i32
    return %c0_i32, %c0_i32_0, %c0_i32_1 : i32, i32, i32
  }
  func.func @transform_2(%arg0: i32) -> (i32, i32, i32) {
    %c0_i32 = arith.constant 0 : i32
    %c0_i32_0 = arith.constant 0 : i32
    %c0_i32_1 = arith.constant 0 : i32
    %c0_i32_2 = arith.constant 0 : i32
    return %c0_i32, %c0_i32_0, %c0_i32_1 : i32, i32, i32
  }
  func.func @transform_3(%arg0: i32) -> (i32, i32, i32) {
    %c0_i32 = arith.constant 0 : i32
    %c0_i32_0 = arith.constant 0 : i32
    %c0_i32_1 = arith.constant 0 : i32
    %c0_i32_2 = arith.constant 0 : i32
    return %c0_i32, %c0_i32_0, %c0_i32_1 : i32, i32, i32
  }
  func.func @transform_4(%arg0: i32) -> (i32, i32, i32) {
    %c0_i32 = arith.constant 0 : i32
    %c0_i32_0 = arith.constant 0 : i32
    %c0_i32_1 = arith.constant 0 : i32
    %c0_i32_2 = arith.constant 0 : i32
    return %c0_i32, %c0_i32_0, %c0_i32_1 : i32, i32, i32
  }
  func.func @transform_5(%arg0: i32) -> (i32, i32, i32) {
    %c0_i32 = arith.constant 0 : i32
    %c0_i32_0 = arith.constant 0 : i32
    %c0_i32_1 = arith.constant 0 : i32
    %c0_i32_2 = arith.constant 0 : i32
    return %c0_i32, %c0_i32_0, %c0_i32_1 : i32, i32, i32
  }
  func.func @transform_6(%arg0: i32) -> (i32, i32) {
    %c0_i32 = arith.constant 0 : i32
    %c0_i32_0 = arith.constant 0 : i32
    %c0_i32_1 = arith.constant 0 : i32
    return %c0_i32, %c0_i32_0 : i32, i32
  }
  func.func @transform_7(%arg0: i32) -> (i32, i32, i32) {
    %c0_i32 = arith.constant 0 : i32
    %c0_i32_0 = arith.constant 0 : i32
    %c0_i32_1 = arith.constant 0 : i32
    %c0_i32_2 = arith.constant 0 : i32
    return %c0_i32, %c0_i32_0, %c0_i32_1 : i32, i32, i32
  }
  func.func @transform_8(%arg0: i32) -> (i32, i32) {
    %c0_i32 = arith.constant 0 : i32
    %c0_i32_0 = arith.constant 0 : i32
    %c0_i32_1 = arith.constant 0 : i32
    return %c0_i32, %c0_i32_0 : i32, i32
  }
  func.func @transform_9(%arg0: i32) -> (i32, i32) {
    %c0_i32 = arith.constant 0 : i32
    %c0_i32_0 = arith.constant 0 : i32
    %c0_i32_1 = arith.constant 0 : i32
    return %c0_i32, %c0_i32_0 : i32, i32
  }
  func.func @transform_10(%arg0: i32) -> (i32, i32) {
    %c0_i32 = arith.constant 0 : i32
    %c0_i32_0 = arith.constant 0 : i32
    %c0_i32_1 = arith.constant 0 : i32
    return %c0_i32, %c0_i32_0 : i32, i32
  }
  func.func @transform_11(%arg0: i32) -> (i32, i32) {
    %c0_i32 = arith.constant 0 : i32
    %c0_i32_0 = arith.constant 0 : i32
    %c0_i32_1 = arith.constant 0 : i32
    return %c0_i32, %c0_i32_0 : i32, i32
  }
  func.func @transform_12(%arg0: i32) -> (i32, i32, i32) {
    %c0_i32 = arith.constant 0 : i32
    %c0_i32_0 = arith.constant 0 : i32
    %c0_i32_1 = arith.constant 0 : i32
    return %arg0, %c0_i32, %c0_i32_0 : i32, i32, i32
  }
}

</mosaic_0001>

<bundles_post_ra>
// kernel: tpu_custom_call.1
= control target key start
LH: loop header
LB: loop body
LE: loop exit
PB: predicated region body
PF: predicated region fallthrough
CT: control target
= control target key end

     0   :  { %s5450_s0 = inlined_call_operand.hbm [shape: f32[2,16,96], index: 0, kind: input, shape index: {}]   ;;  %s5451_s1 = inlined_call_operand.vmem [shape: f32[3,18,16], index: 1, kind: input, shape index: {}]   ;;  %s5452_s2 = inlined_call_operand.vmem [shape: f32[3,18,18], index: 2, kind: input, shape index: {}]   ;;  %s5453_s3 = inlined_call_operand.hbm [shape: f32[3,96,108], index: 3, kind: input, shape index: {}]   ;;  %s5454_s4 = inlined_call_operand.vmem [shape: f32[3,108,108], index: 4, kind: input, shape index: {}]   ;;  %s5455_s5 = inlined_call_operand.hbm [shape: f32[3,108,108], index: 5, kind: input, shape index: {}]   ;;  %s5456_s6 = inlined_call_operand.vmem [shape: f32[96,108], index: 6, kind: input, shape index: {}]   ;;  %s5457_s7 = inlined_call_operand.vmem [shape: f32[4,18,108], index: 7, kind: input, shape index: {}]   ;;  %s5458_s8 = inlined_call_operand.vmem [shape: f32[8,18], index: 8, kind: input, shape index: {}]   ;;  %s5459_s9 = inlined_call_operand.hbm [shape: f32[8,18], index: 9, kind: input, shape index: {}]   ;;  %s5460_s10 = inlined_call_operand.vmem [shape: f32[108,48], index: 10, kind: input, shape index: {}]   ;;  %s5461_s11 = inlined_call_operand.vmem [shape: f32[108,48], index: 11, kind: input, shape index: {}]   ;;  %s5462_s12 = inlined_call_operand.hbm [shape: f32[2,8,48], index: 12, kind: output, shape index: {}]  }
   0x1   :  { %5471 = sst [smem:[#allocation17_spill]] %s5458_s8 }
   0x2   :  { %5472 = sst [smem:[#allocation18_spill]] %s5460_s10 }
   0x3   :  { %5473 = sst [smem:[#allocation19_spill]] %s5461_s11 }
   0x4   :  { %5474 = sst [smem:[#allocation20_spill]] %s5462_s12 }
   0x5   :  { %17 = vsyncpa [#allocation3], 0 }
   0x6   :  { %19 = vsyncpa [#allocation3 + $0x1], 0 }
   0x7   :  { %20 = vsyncpa [#allocation6], 0 }
   0x8   :  { %21 = vsyncpa [#allocation9], 0 }
   0x9   :  { %22 = vsyncpa [#allocation4], 0 }
   0xa   :  { %24 = vsyncpa [#allocation4 + $0x1], 0  ;;  %s4467_s21 = smov 0   ;;  %s4469_s22 = smov 0  }
   0xb   :  { %s4471_s23 = smov 0   ;;  %s4473_s24 = smov 0  }
   0xc LB: > { %5475 = sst [smem:[#allocation15_spill]] %s4377_s21  ;;  %s4488_s25 = sadd.s32 4294967295, %s4389_s24   ;;  %s4389_s24 = sphi %s4473_s24, %s5505_s24   ;;  %s4385_s23 = sphi %s4471_s23, %s5504_s23   ;;  %s4381_s22 = sphi %s4469_s22, %s5503_s22   ;;  %s4377_s21 = sphi %s4467_s21, %s5502_s21  }
   0xd   : > { %s2823_s26 = sadd.s32 4294967294, %s4389_s24   ;;  %p50_p0 = scmp.ne.s32.totalorder %s4381_s22, %s4377_s21 }
   0xe   : > { %p5465_p1 = scmp.eq.s32.totalorder %s4488_s25, 0  ;;  %p311_p3 = scmp.eq.s32.totalorder %s2823_s26, 1 }
   0xf   : > { %p2824_p5 = scmp.ge.s32.totalorder %s4389_s24, 1  ;;  %p318_p7 = scmp.lt.s32.totalorder %s4389_s24, 3 }
  0x10   : > { %p4497_p4 = por %p5465_p1, %p50_p0  ;;  %p4502_p6 = por %p311_p3, %p50_p0 }
  0x11   : > { %p4507_p8 = pnand %p2824_p5, %p318_p7  ;;  %s4391_s30 = smov [#allocation5]  }
  0x12   : > { %s5476_s27 = scalar_select %p4497_p4, 1, 0 }
  0x13   : > { %s5477_s28 = scalar_select %p4502_p6, 1, 0 }
  0x14   : > { %s5479_s29 = scalar_select %p4507_p8, 1, 0 }
  0x15   : > { %5478 = sst [smem:[#allocation16_spill]] %s5477_s28  ;;  %s336_s13 = sshll.u32 %s4391_s30, 4  ;;  %s4511_s13 = int_to_ptr.vmem [resolvable:$true] %s336_s13 }
  0x16   : > { %p4134_p9 = pneg %p4507_p8  ;;  %s4392_s15 = smov [#allocation7]  }
  0x17   : > { %s352_s16 = sshll.u32 %s4392_s15, 4  ;;  %s4393_s17 = smov [#allocation8]   ;;  %s4522_s16 = int_to_ptr.vmem [resolvable:$true] %s352_s16 }
  0x18   : > { %p4518_p11 = pnand %p4134_p9, %p5465_p1  ;;  %s4524_s18 = sshll.u32 %s4393_s17, 4  ;;  %s376_s18 = int_to_ptr.vmem [resolvable:$true] %s4524_s18 }
  0x19   : > { %s4201_s26 = scalar_lea.hbm %s5453_s3, 4608 }
  0x1a   : > { %p4202_p12 = scmp.ne.s32.totalorder %s5453_s3, %s4201_s26  ;;  %p4534_p13 = pneg %p4518_p11 }
  0x1b   : > { %p4208_p5 = scmp.lt.u32.totalorder %s4201_s26, %s5453_s3 }
  0x1c   : > { %p4204_p0 = pnand %p4534_p13, %p4202_p12 }
  0x1e   : > { %p4205_p3 = pneg %p4204_p0 }
  0x20   : > { %p4210_p7 = pnand %p4208_p5, %p4205_p3 }
  0x22   : > { %4213 = shalt.err (!%p4210_p7)
}
  0x23   : > { %s4214_s28 = scalar_lea.vmem %s4511_s13, 4608  ;;  %p4222_p2 = scmp.lt.s32.totalorder %s4511_s13, %s4511_s13 }
  0x24   : > { %p4215_p9 = scmp.ne.s32.totalorder %s4511_s13, %s4214_s28  ;;  %p4223_p6 = scmp.lt.s32.totalorder %s4214_s28, %s4214_s28 }
  0x26   : > { %p4217_p10 = pnand %p4215_p9, %p4534_p13  ;;  %p4224_p12 = por %p4223_p6, %p4222_p2 }
  0x28   : > { %p4218_p1 = pneg %p4217_p10 }
  0x2a   : > { %p4225_p0 = pnand %p4224_p12, %p4218_p1 }
  0x2c   : > { %4228 = shalt.err (!%p4225_p0)
}
  0x2d   : > { %s4394_s19 = smov 128   ;;  %s4395_s20 = smov 8  }
  0x2e   : > { %4137 = dma.hbm_to_vmem [thread:$0]  (!%p4518_p11), %s5453_s3, 4608, %s4511_s13, [#allocation6], %s4394_s19, %s4394_s19, %s4395_s20  }
  0x2f   : > { %s4229_s28 = scalar_lea.hbm %s5455_s5, 5376 }
  0x30   : > { %p4230_p1 = scmp.ne.s32.totalorder %s5455_s5, %s4229_s28  ;;  %p4236_p10 = scmp.lt.u32.totalorder %s4229_s28, %s5455_s5 }
  0x32   : > { %p4232_p2 = pnand %p4230_p1, %p4534_p13 }
  0x34   : > { %p4233_p6 = pneg %p4232_p2 }
  0x36   : > { %p4238_p3 = pnand %p4236_p10, %p4233_p6 }
  0x38   : > { %4241 = shalt.err (!%p4238_p3)
}
  0x39   : > { %s4242_s13 = scalar_lea.vmem %s4522_s16, 5376  ;;  %p4250_p12 = scmp.lt.s32.totalorder %s4522_s16, %s4522_s16 }
  0x3a   : > { %p4243_p5 = scmp.ne.s32.totalorder %s4522_s16, %s4242_s13  ;;  %p4251_p0 = scmp.lt.s32.totalorder %s4242_s13, %s4242_s13 }
  0x3c   : > { %p4245_p7 = pnand %p4243_p5, %p4534_p13  ;;  %p4252_p1 = por %p4251_p0, %p4250_p12 }
  0x3e   : > { %p4246_p9 = pneg %p4245_p7 }
  0x40   : > { %p4253_p2 = pnand %p4252_p1, %p4246_p9 }
  0x42   : > { %4256 = shalt.err (!%p4253_p2)
}
  0x43   : > { %4140 = dma.hbm_to_vmem [thread:$0]  (!%p4518_p11), %s5455_s5, 5376, %s4522_s16, [#allocation6], %s4394_s19, %s4394_s19, %s4395_s20  }
  0x44   : > { %s4257_s26 = scalar_lea.hbm %s5459_s9, 128 }
  0x45   : > { %p4258_p6 = scmp.ne.s32.totalorder %s5459_s9, %s4257_s26  ;;  %p4264_p5 = scmp.lt.u32.totalorder %s4257_s26, %s5459_s9 }
  0x47   : > { %p4260_p10 = pnand %p4258_p6, %p4534_p13 }
  0x49   : > { %p4261_p3 = pneg %p4260_p10 }
  0x4b   : > { %p4266_p7 = pnand %p4264_p5, %p4261_p3 }
  0x4d   : > { %4269 = shalt.err (!%p4266_p7)
}
  0x4e   : > { %s4270_s13 = scalar_lea.vmem %s376_s18, 128  ;;  %p4278_p1 = scmp.lt.s32.totalorder %s376_s18, %s376_s18 }
  0x4f   : > { %p4271_p9 = scmp.ne.s32.totalorder %s376_s18, %s4270_s13  ;;  %p4279_p2 = scmp.lt.s32.totalorder %s4270_s13, %s4270_s13 }
  0x51   : > { %p4273_p12 = pnand %p4271_p9, %p4534_p13  ;;  %p4280_p4 = por %p4279_p2, %p4278_p1 }
  0x53   : > { %p4274_p0 = pneg %p4273_p12 }
  0x55   : > { %p4281_p8 = pnand %p4280_p4, %p4274_p0 }
  0x57   : > { %4284 = shalt.err (!%p4281_p8)
}
  0x58   : > { %4143 = dma.hbm_to_vmem [thread:$0]  (!%p4518_p11), %s5459_s9, 128, %s376_s18, [#allocation9]  }
  0x59   : > { %s4604_s21 = sadd.s32 1, %s4389_s24   ;;  %s37_s14 = sadd.s32 1, %s4385_s23 }
  0x5a   : > { %s34_s10 = ssub.s32 %s4389_s24, %s4604_s21  ;;  %p44_p8 = scmp.ne.s32.totalorder %s4385_s23, %s4381_s22 }
  0x5b   : > { %p35_p4 = scmp.eq.s32.totalorder %s34_s10, 0  ;;  %p45_p13 = scmp.eq.s32.totalorder %s4389_s24, 0 }
  0x5c   : > { %p4155_p6 = scmp.lt.s32.totalorder %s4389_s24, 2  ;;  %p5482_p3 = scmp.eq.s32.totalorder %s4488_s25, 1 }
  0x5d   : > { %s4614_s11 = scalar_select %p35_p4, %s4385_s23, %s37_s14  }
  0x5e   : > { %p46_p10 = por %p45_p13, %p44_p8  ;;  %p4618_p5 = por %p5482_p3, %p44_p8 }
  0x5f   : > { %s392_s26 = sand.u32 1, %s4385_s23   ;;  %s2968_s30 = sshll.u32 %s4389_s24, 8 }
  0x60   : > { %s2829_s18 = sshll.u32 %s392_s26, 4  ;;  %s4627_s28 = scalar_lea.hbm %s5450_s0, %s2968_s30 }
  0x61   : > { %s396_s13 = scalar_lea.vmem [#allocation2], %s2829_s18  ;;  %p4629_p11 = pnand %p4155_p6, %p46_p10 }
  0x62   : > { %s403_s16 = sshll.u32 %s396_s13, 4  ;;  %s4635_s10 = scalar_lea.sflag [#allocation3], %s392_s26  ;;  %s4633_s16 = int_to_ptr.vmem [resolvable:$true] %s403_s16 }
  0x63   : > { %s4285_s14 = scalar_lea.hbm %s4627_s28, 256  ;;  %p4287_p9 = pneg %p4629_p11 }
  0x64   : > { %p4286_p7 = scmp.ne.s32.totalorder %s4627_s28, %s4285_s14  ;;  %s4290_s15 = scalar_lea.hbm %s5450_s0, 512 }
  0x65   : > { %p4291_p1 = scmp.lt.u32.totalorder %s4627_s28, %s5450_s0  ;;  %p4292_p2 = scmp.lt.u32.totalorder %s4290_s15, %s4285_s14 }
  0x66   : > { %p4288_p12 = pnand %p4287_p9, %p4286_p7  ;;  %p4294_p8 = scmp.lt.u32.totalorder %s4285_s14, %s4627_s28 }
  0x67   : > { %p4293_p4 = por %p4292_p2, %p4291_p1 }
  0x68   : > { %p4289_p0 = pneg %p4288_p12 }
  0x69   : > { %p4295_p13 = por %p4294_p8, %p4293_p4 }
  0x6b   : > { %p4296_p6 = pnand %p4295_p13, %p4289_p0 }
  0x6d   : > { %4299 = shalt.err (!%p4296_p6)
}
  0x6e   : > { %s4300_s26 = scalar_lea.vmem %s4633_s16, 256  ;;  %s4396_s30 = smov [#allocation2]  }
  0x6f   : > { %p4301_p10 = scmp.ne.s32.totalorder %s4633_s16, %s4300_s26  ;;  %s4305_s18 = sshll.u32 %s4396_s30, 4  ;;  %s4306_s18 = int_to_ptr.vmem [resolvable:$false] %s4305_s18 }
  0x70   : > { %s4307_s17 = scalar_lea.vmem %s4306_s18, 512  ;;  %p4308_p12 = scmp.lt.s32.totalorder %s4633_s16, %s4306_s18 }
  0x71   : > { %p4303_p3 = pnand %p4301_p10, %p4287_p9  ;;  %p4309_p1 = scmp.lt.s32.totalorder %s4307_s17, %s4300_s26 }
  0x73   : > { %p4304_p7 = pneg %p4303_p3  ;;  %p4310_p2 = por %p4309_p1, %p4308_p12 }
  0x75   : > { %p4311_p4 = pnand %p4310_p2, %p4304_p7 }
  0x77   : > { %4314 = shalt.err (!%p4311_p4)
}
  0x78   : > { %4147 = dma.hbm_to_vmem [thread:$0]  (!%p4629_p11), %s4627_s28, 256, %s4633_s16, %s4635_s10, %s4394_s19, %s4394_s19, %s4395_s20  }
  0x79   : > { %p5485_p9 = scmp.ne.s32.totalorder %s5479_s29, 0 }
  0x7a   : > { %s4669_s14 = sand.u32 (!%p5485_p9), 1, %s4381_s22   ;;  %p5486_p0 = scmp.ne.s32.totalorder (!%p5485_p9), %s5476_s27, 0 }
  0x7b   : > { %415 = sbr.rel (%p5485_p9) target bundleno = 2310 (0x906), region = 68  ;;  %s2833_s15 = sshll.u32 (!%p5485_p9), %s4669_s14, 4 }
  0x7c   : > { %s418_s13 = scalar_lea.sflag (!%p5485_p9), [#allocation3], %s4669_s14  ;;  %s421_s26 = scalar_lea.vmem (!%p5485_p9), [#allocation2], %s2833_s15 }
  0x82   : > { %4360 = dma.done.wait (%p5486_p0), %s418_s13, 256  }
  0x83   : > { %4362 = vsyncadd (%p5486_p0), %s418_s13, 4294967040  ;;  %p5487_p8 = scmp.eq.s32.totalorder %s4488_s25, 0 }
  0x85   : > { %4364 = dma.done.wait (%p5487_p8), [#allocation6], 9984   ;;  %p5488_p11 = pmov %p5487_p8 }
  0x86   : > { %p5489_p13 = pmov %p5487_p8 }
  0x87   : > { %4366 = vsyncadd (%p5488_p11), [#allocation6], 4294957312 }
  0x88   : > { %4368 = dma.done.wait (%p5489_p13), [#allocation9], 128   ;;  %p5490_p6 = pmov %p5487_p8 }
  0x89   : > { %v4397_v0 = vmov 0.0|0.0   ;;  %vm4398_vm0 = vmmov 0   ;;  %v4399_v1 = vmov 0.0   ;;  %v474_v2 = vld [vmem:[%s421_s26] sm:$0xff]  ;;  %v475_v3 = vld [vmem:[%s421_s26 + $0x8] sm:$0xff]  ;;  %vm479_vm1 = vcmask 130048  }
  0x8a   : > { %4370 = vsyncadd (%p5490_p6), [#allocation9], 4294967168  ;;  %3783 = vmatprep.subr.bf16.mxu0 %v4397_v0  ;;  %3224 = vmatprep.mubr.msk.f32.mxu0 %vm4398_vm0, %v4399_v1  ;;  %v3784_v4 = vpack.c.bf16 %v475_v3, %v474_v2  ;;  %v476_v5 = vld [vmem:[%s5451_s1] sm:$0xff]  ;;  %v2841_v6 = vld [vmem:[%s5451_s1 + $0x18] sm:$0xff]  ;;  %vm770_vm2 = vcmask 785408   ;;  %vm1093_vm3 = vcmask 1041408  }
  0x8b   : > { %3786 = vmatprep.subr.bf16.mxu1 %v4397_v0  ;;  %3237 = vmatprep.mubr.msk.f32.mxu1 %vm4398_vm0, %v4399_v1  ;;  %v758_v7 = vld [vmem:[#allocation5] sm:$0xff]  ;;  %v759_v8 = vld [vmem:[#allocation5 + $0x8] sm:$0xff]  ;;  %v760_v10 = vld [vmem:[#allocation5 + $0x10] sm:$0xff]  ;;  %vm1083_vm4 = vcmask 146432   ;;  %vm1201_vm5 = vcmask 1043456   ;;  %vm4400_vm6 = vmmov 1  }
  0x8c   : > { %3785 = vmatpush3.bf16.msra.mxu0 %v3784_v4  ;;  %3788 = vmatpush3.bf16.msra.mxu1 %v3784_v4  ;;  %v3793_v9 = vpack.c.bf16 %v759_v8, %v758_v7  ;;  %v761_v11 = vld [vmem:[#allocation5 + $0x18] sm:$0xff]  ;;  %v477_v12 = vld [vmem:[%s5451_s1 + $0x8] sm:$0xff]  ;;  %v2842_v13 = vld [vmem:[%s5451_s1 + $0x20] sm:$0xff]  ;;  %vm1191_vm8 = vcmask 883712   ;;  %s5493_s19 = sld [smem:[#allocation18_spill]]  ;;  %s5494_s10 = sld [smem:[#allocation17_spill]] }
  0x8d   : > { %3789 = vmatprep.subr.bf16.mxu0 %v4397_v0  ;;  %3792 = vmatprep.subr.bf16.mxu1 %v4397_v0  ;;  %v3796_v14 = vpack.c.bf16 %v761_v11, %v760_v10  ;;  %v762_v15 = vld [vmem:[#allocation5 + $0x20] sm:$0xff]  ;;  %v763_v16 = vld [vmem:[#allocation5 + $0x28] sm:$0xff]  ;;  %v478_v17 = vld [vmem:[%s5451_s1 + $0x10] sm:$0x3]  ;;  %s5495_s30 = sld [smem:[#allocation19_spill]]  ;;  %s2837_s15 = sshll.u32 %s4669_s14, 3 }
  0x8e   : > { %v2843_v18 = vld [vmem:[%s5451_s1 + $0x28] sm:$0x3]  ;;  %v3799_v19 = vpack.c.bf16 %v763_v16, %v762_v15  ;;  %v764_v20 = vld [vmem:[#allocation5 + $0x30] sm:$0xff]  ;;  %v765_v21 = vld [vmem:[#allocation5 + $0x38] sm:$0xff]  ;;  %s2965_s13 = sshll.u32 %s4488_s25, 7  ;;  %s473_s26 = scalar_lea.vmem [#allocation10], %s2837_s15 }
  0x8f   : > { %3225 = vmatmul.mubr.msk.f32.vlgmr.msra.gmra.mrb[0].mxu0 %vm479_vm1, %v476_v5  ;;  %3238 = vmatmul.mubr.msk.f32.vlgmr.msra.gmra.mrb[0].mxu1 %vm479_vm1, %v2841_v6  ;;  %v2847_v22 = vld [vmem:[%s5451_s1 + $0x30] sm:$0xff]  ;;  %v3802_v23 = vpack.c.bf16 %v765_v21, %v764_v20  ;;  %v766_v24 = vld [vmem:[#allocation5 + $0x40] sm:$0xff]  ;;  %v767_v25 = vld [vmem:[#allocation5 + $0x48] sm:$0xff]  ;;  %s2724_s27 = sshll.u32 %s473_s26, 4  ;;  %vm2708_vm9 = vcmask 392192   ;;  %s5496_s28 = sld [smem:[#allocation20_spill]]  ;;  %s5408_s27 = int_to_ptr.vmem [resolvable:$true] %s2724_s27 }
  0x90   : > { %3227 = vmatprep.mubr.msk.f32.mxu0 %vm4398_vm0, %v4399_v1  ;;  %3240 = vmatprep.mubr.msk.f32.mxu1 %vm4398_vm0, %v4399_v1  ;;  %v2848_v26 = vld [vmem:[%s5451_s1 + $0x38] sm:$0xff]  ;;  %v3805_v27 = vpack.c.bf16 %v767_v25, %v766_v24  ;;  %v768_v28 = vld [vmem:[#allocation5 + $0x50] sm:$0xff]  ;;  %v2849_v30 = vld [vmem:[%s5451_s1 + $0x40] sm:$0x3]  ;;  %s2711_s8 = scalar_lea.sflag [#allocation4], %s4669_s14  ;;  %s4401_s25 = smov [#allocation10]  }
  0x91   : > { %3791 = vmatpush3.bf16.msra.mxu0 %v3784_v4  ;;  %3794 = vmatpush3.bf16.msra.mxu1 %v3793_v9  ;;  %v769_v29 = vld [vmem:[#allocation5 + $0x58] sm:$0xff]  ;;  %v864_v32 = vld [vmem:[#allocation5 + $0x60] sm:$0xff]  ;;  %v865_v33 = vld [vmem:[#allocation5 + $0x68] sm:$0xff]  ;;  %s4319_s18 = sshll.u32 %s4401_s25, 4  ;;  %s4320_s18 = int_to_ptr.vmem [resolvable:$false] %s4319_s18 }
  0x92   : > { %3795 = vmatprep.subr.bf16.mxu1 %v4397_v0  ;;  %3846 = vmatprep.subr.bf16.mxu0 %v4397_v0  ;;  %v3808_v31 = vpack.c.bf16 %v769_v29, %v768_v28  ;;  %v3811_v34 = vpack.c.bf16 %v865_v33, %v864_v32  ;;  %v866_v35 = vld [vmem:[#allocation5 + $0x70] sm:$0xff]  ;;  %v867_v36 = vld [vmem:[#allocation5 + $0x78] sm:$0xff]  ;;  %v868_v42 = vld [vmem:[#allocation5 + $0x80] sm:$0xff]  ;;  %s4321_s17 = scalar_lea.vmem %s4320_s18, 256  ;;  %p4322_p12 = scmp.lt.s32.totalorder %s5408_s27, %s4320_s18 }
  0x93   : > { %3228 = vmatmul.mubr.msk.f32.gmra.mrb[2].mxu0 %vm479_vm1, %v477_v12  ;;  %3241 = vmatmul.mubr.msk.f32.gmra.mrb[2].mxu1 %vm479_vm1, %v2842_v13  ;;  %v3814_v41 = vpack.c.bf16 %v867_v36, %v866_v35  ;;  %v869_v43 = vld [vmem:[#allocation5 + $0x88] sm:$0xff]  ;;  %v870_v49 = vld [vmem:[#allocation5 + $0x90] sm:$0xff]  ;;  %v871_v50 = vld [vmem:[#allocation5 + $0x98] sm:$0xff] }
  0x94   : > { %3230 = vmatprep.mubr.msk.f32.mxu0 %vm4398_vm0, %v4399_v1  ;;  %3243 = vmatprep.mubr.msk.f32.mxu1 %vm4398_vm0, %v4399_v1  ;;  %v3817_v48 = vpack.c.bf16 %v869_v43, %v868_v42  ;;  %v3820_v55 = vpack.c.bf16 %v871_v50, %v870_v49  ;;  %v872_v56 = vld [vmem:[#allocation5 + $0xa0] sm:$0xff]  ;;  %v873_v57 = vld [vmem:[#allocation5 + $0xa8] sm:$0xff]  ;;  %v874_v61 = vld [vmem:[#allocation5 + $0xb0] sm:$0xff] }
  0x95   : > { %3797 = vmatpush3.bf16.msra.mxu1 %v3796_v14  ;;  %v3823_v60 = vpack.c.bf16 %v873_v57, %v872_v56  ;;  %v875_v62 = vld [vmem:[#allocation5 + $0xb8] sm:$0xff]  ;;  %v969_v4 = vld [vmem:[#allocation5 + $0xc0] sm:$0xff]  ;;  %v970_v5 = vld [vmem:[#allocation5 + $0xc8] sm:$0xff]  ;;  %s5406_s16 = scalar_lea.hbm %s5496_s28, %s2965_s13 }
  0x96   : > { %3798 = vmatprep.subr.bf16.mxu1 %v4397_v0  ;;  %v3826_v3 = vpack.c.bf16 %v875_v62, %v874_v61  ;;  %v3829_v8 = vpack.c.bf16 %v970_v5, %v969_v4  ;;  %v971_v9 = vld [vmem:[#allocation5 + $0xd0] sm:$0xff]  ;;  %v972_v10 = vld [vmem:[#allocation5 + $0xd8] sm:$0xff]  ;;  %v973_v12 = vld [vmem:[#allocation5 + $0xe0] sm:$0xff] }
  0x97   : > { %3231 = vmatmul.mubr.msk.f32.gmra.mrb[4].mxu0 %vm479_vm1, %v478_v17  ;;  %3244 = vmatmul.mubr.msk.f32.gmra.mrb[4].mxu1 %vm479_vm1, %v2843_v18  ;;  %v3832_v11 = vpack.c.bf16 %v972_v10, %v971_v9  ;;  %v974_v13 = vld [vmem:[#allocation5 + $0xe8] sm:$0xff]  ;;  %v975_v15 = vld [vmem:[#allocation5 + $0xf0] sm:$0xff]  ;;  %v976_v16 = vld [vmem:[#allocation5 + $0xf8] sm:$0xff] }
  0x98   : > { %3250 = vmatprep.mubr.msk.f32.mxu0 %vm4398_vm0, %v4399_v1  ;;  %3283 = vmatprep.mubr.msk.f32.mxu1 %vm4398_vm0, %v4399_v1  ;;  %v3835_v14 = vpack.c.bf16 %v974_v13, %v973_v12  ;;  %v3838_v17 = vpack.c.bf16 %v976_v16, %v975_v15  ;;  %v977_v18 = vld [vmem:[#allocation5 + $0x100] sm:$0xff]  ;;  %v979_v21 = vld [vmem:[#allocation5 + $0x110] sm:$0xff]  ;;  %v1184_v56 = vld [vmem:[%s5454_s4 + $0x38] sm:$0xff] }
  0x99   : > { %3800 = vmatpush3.bf16.msra.mxu1 %v3799_v19  ;;  %v978_v19 = vld [vmem:[#allocation5 + $0x108] sm:$0xff]  ;;  %v755_v24 = vld [vmem:[%s5457_s7] sm:$0xff]  ;;  %v757_v32 = vld [vmem:[%s5457_s7 + $0x10] sm:$0x3] }
  0x9a   : > { %3801 = vmatprep.subr.bf16.mxu1 %v4397_v0  ;;  %v3841_v20 = vpack.c.bf16 %v978_v19, %v977_v18  ;;  %v4828_v43 = vld [vmem:[%s5452_s2] sm:$0xff]  ;;  %v1187_v61 = vld [vmem:[%s5454_s4 + $0x50] sm:$0xff]  ;;  %v1188_v62 = vld [vmem:[%s5454_s4 + $0x58] sm:$0xff] }
  0x9b   : > { %3251 = vmatmul.mubr.msk.f32.vlgmr.msra.gmra.mrb[6].mxu0 %vm479_vm1, %v2847_v22  ;;  %v980_v22 = vld [vmem:[#allocation5 + $0x118] sm:$0xff]  ;;  %v1181_v50 = vld [vmem:[%s5454_s4 + $0x20] sm:$0xff]  ;;  %vm4900_vm7 = vmpackc.low %vm1201_vm5, %vm4400_vm6 }
  0x9c   : > { %3253 = vmatprep.mubr.msk.f32.mxu0 %vm4398_vm0, %v4399_v1  ;;  %v2880_v13 = vld [vmem:[%s5454_s4 + $0x70] sm:$0xff]  ;;  %v2882_v19 = vld [vmem:[%s5454_s4 + $0x80] sm:$0xff] }
  0x9d   : > { %3803 = vmatpush3.bf16.msra.mxu1 %v3802_v23  ;;  %v3844_v23 = vpack.c.bf16 %v980_v22, %v979_v21  ;;  %v4972_v21 = vld [vmem:[%s5452_s2 + $0x20] sm:$0xff] }
  0x9e   : > { %3804 = vmatprep.subr.bf16.mxu1 %v4397_v0 }
  0x9f   : > { %3254 = vmatmul.mubr.msk.f32.gmra.mrb[8].mxu0 %vm479_vm1, %v2848_v26 }
  0xa0   : > { %3256 = vmatprep.mubr.msk.f32.mxu0 %vm4398_vm0, %v4399_v1 }
  0xa1   : > { %3806 = vmatpush3.bf16.msra.mxu1 %v3805_v27  ;;  %v756_v27 = vld [vmem:[%s5457_s7 + $0x8] sm:$0xff] }
  0xa2   : > { %3807 = vmatprep.subr.bf16.mxu1 %v4397_v0 }
  0xa3   : > { %3257 = vmatmul.mubr.msk.f32.gmra.mrb[10].mxu0 %vm479_vm1, %v2849_v30 }
  0xa4   : > { %3364 = vmatprep.mubr.msk.f32.mxu0 %vm4398_vm0, %v4399_v1 }
  0xa5   : > { %3809 = vmatpush3.bf16.msra.mxu1 %v3808_v31 }
  0xa6   : > { %3810 = vmatprep.subr.bf16.mxu1 %v4397_v0 }
 0x162   : > { %v555_v37 = vpop.f32.mrb[0].mxu0  ;;  %v4754_v38 = vpop.f32.mrb[0].mxu1 }
 0x163   : > { %v3226_v39 = vpop.f32.mrb[1].mxu0  ;;  %3284 = vmatmul.mubr.msk.f32.vlgmr.msra.gmra.mrb[6].mxu1 %vm770_vm2, %v555_v37  ;;  %v3239_v40 = vpop.f32.mrb[1].mxu1 }
 0x164   : > { %3812 = vmatpush3.bf16.msra.mxu1 %v3811_v34  ;;  %3286 = vmatprep.mubr.msk.f32.mxu1 %vm4398_vm0, %v4399_v1  ;;  %v1177_v40 = vld [vmem:[%s5454_s4] sm:$0xff] }
 0x165   : > { %3813 = vmatprep.subr.bf16.mxu1 %v4397_v0 }
 0x166   : > { %v560_v44 = vpop.f32.mrb[2].mxu0  ;;  %v4760_v45 = vpop.f32.mrb[2].mxu1 }
 0x167   : > { %v3229_v46 = vpop.f32.mrb[3].mxu0  ;;  %3287 = vmatmul.mubr.msk.f32.gmra.mrb[8].mxu1 %vm770_vm2, %v560_v44  ;;  %v3242_v47 = vpop.f32.mrb[3].mxu1 }
 0x168   : > { %3815 = vmatpush3.bf16.msra.mxu1 %v3814_v41  ;;  %3289 = vmatprep.mubr.msk.f32.mxu1 %vm4398_vm0, %v4399_v1  ;;  %v1178_v41 = vld [vmem:[%s5454_s4 + $0x8] sm:$0xff]  ;;  %v1179_v46 = vld [vmem:[%s5454_s4 + $0x10] sm:$0xff]  ;;  %v1180_v47 = vld [vmem:[%s5454_s4 + $0x18] sm:$0xff] }
 0x169   : > { %3816 = vmatprep.subr.bf16.mxu1 %v4397_v0  ;;  %v3850_v44 = vpack.c.bf16 %v1178_v41, %v1177_v40  ;;  %v3853_v49 = vpack.c.bf16 %v1180_v47, %v1179_v46 }
 0x16a   : > { %v565_v51 = vpop.f32.mrb[4].mxu0  ;;  %v4766_v52 = vpop.f32.mrb[4].mxu1 }
 0x16b   : > { %v3232_v53 = vpop.f32.mrb[5].mxu0  ;;  %3290 = vmatmul.mubr.msk.f32.gmra.mrb[10].mxu1 %vm770_vm2, %v565_v51  ;;  %v3245_v54 = vpop.f32.mrb[5].mxu1  ;;  %v1182_v51 = vld [vmem:[%s5454_s4 + $0x28] sm:$0xff] }
 0x16c   : > { %3818 = vmatpush3.bf16.msra.mxu1 %v3817_v48  ;;  %3316 = vmatprep.mubr.msk.f32.mxu1 %vm4398_vm0, %v4399_v1  ;;  %v4848_v48 = vld [vmem:[%s5452_s2 + $0x8] sm:$0xff]  ;;  %v4865_v53 = vld [vmem:[%s5452_s2 + $0x10] sm:$0x3]  ;;  %v3856_v54 = vpack.c.bf16 %v1182_v51, %v1181_v50 }
 0x16d   : > { %3819 = vmatprep.subr.bf16.mxu1 %v4397_v0  ;;  %v2906_v50 = vld [vmem:[%s5454_s4 + $0xe8] sm:$0xff] }
 0x16e   : > { %v741_v58 = vpop.f32.mrb[6].mxu0 }
 0x16f   : > { %v3252_v59 = vpop.f32.mrb[7].mxu0 }
 0x170   : > { %3821 = vmatpush3.bf16.msra.mxu1 %v3820_v55  ;;  %v1183_v55 = vld [vmem:[%s5454_s4 + $0x30] sm:$0xff]  ;;  %v1186_v59 = vld [vmem:[%s5454_s4 + $0x48] sm:$0xff] }
 0x171   : > { %3822 = vmatprep.subr.bf16.mxu1 %v4397_v0  ;;  %v3859_v57 = vpack.c.bf16 %v1184_v56, %v1183_v55  ;;  %v2908_v55 = vld [vmem:[%s5454_s4 + $0xf8] sm:$0xff] }
 0x172   : > { %v746_v63 = vpop.f32.mrb[8].mxu0 }
 0x173   : > { %v3255_v2 = vpop.f32.mrb[9].mxu0 }
 0x174   : > { %3824 = vmatpush3.bf16.msra.mxu1 %v3823_v60  ;;  %v1189_v2 = vld [vmem:[%s5454_s4 + $0x60] sm:$0xff] }
 0x175   : > { %3825 = vmatprep.subr.bf16.mxu1 %v4397_v0 }
 0x176   : > { %v751_v6 = vpop.f32.mrb[10].mxu0 }
 0x177   : > { %v3258_v7 = vpop.f32.mrb[11].mxu0 }
 0x178   : > { %3827 = vmatpush3.bf16.msra.mxu1 %v3826_v3  ;;  %v1190_v3 = vld [vmem:[%s5454_s4 + $0x68] sm:$0xf]  ;;  %v4919_v7 = vld [vmem:[%s5452_s2 + $0x38] sm:$0xff] }
 0x179   : > { %3828 = vmatprep.subr.bf16.mxu1 %v4397_v0  ;;  %v3868_v4 = vpack.c.bf16 %v1190_v3, %v1189_v2  ;;  %v2911_v2 = vld [vmem:[%s5454_s4 + $0x110] sm:$0xff]  ;;  %v2912_v3 = vld [vmem:[%s5454_s4 + $0x118] sm:$0xff] }
 0x17b   : > { %3317 = vmatmul.mubr.msk.f32.vlgmr.msra.gmra.mrb[6].mxu1 %vm770_vm2, %v4754_v38 }
 0x17c   : > { %3830 = vmatpush3.bf16.msra.mxu1 %v3829_v8  ;;  %3319 = vmatprep.mubr.msk.f32.mxu1 %vm4398_vm0, %v4399_v1  ;;  %v4928_v8 = vld [vmem:[%s5452_s2 + $0x40] sm:$0x3] }
 0x17d   : > { %3831 = vmatprep.subr.bf16.mxu1 %v4397_v0 }
 0x17f   : > { %3320 = vmatmul.mubr.msk.f32.gmra.mrb[8].mxu1 %vm770_vm2, %v4760_v45 }
 0x180   : > { %3833 = vmatpush3.bf16.msra.mxu1 %v3832_v11  ;;  %3322 = vmatprep.mubr.msk.f32.mxu1 %vm4398_vm0, %v4399_v1 }
 0x181   : > { %3834 = vmatprep.subr.bf16.mxu1 %v4397_v0 }
 0x183   : > { %3323 = vmatmul.mubr.msk.f32.gmra.mrb[10].mxu1 %vm770_vm2, %v4766_v52 }
 0x184   : > { %3836 = vmatpush3.bf16.msra.mxu1 %v3835_v14  ;;  %3349 = vmatprep.mubr.msk.f32.mxu1 %vm4398_vm0, %v4399_v1  ;;  %v2881_v14 = vld [vmem:[%s5454_s4 + $0x78] sm:$0xff] }
 0x185   : > { %3837 = vmatprep.subr.bf16.mxu1 %v4397_v0  ;;  %v3875_v18 = vpack.c.bf16 %v2881_v14, %v2880_v13  ;;  %v2915_v14 = vld [vmem:[%s5454_s4 + $0x130] sm:$0xff] }
 0x188   : > { %3839 = vmatpush3.bf16.msra.mxu1 %v3838_v17  ;;  %v4957_v17 = vld [vmem:[%s5452_s2 + $0x18] sm:$0xff] }
 0x189   : > { %3840 = vmatprep.subr.bf16.mxu1 %v4397_v0 }
 0x18c   : > { %3842 = vmatpush3.bf16.msra.mxu1 %v3841_v20  ;;  %v2883_v20 = vld [vmem:[%s5454_s4 + $0x88] sm:$0xff] }
 0x18d   : > { %3843 = vmatprep.subr.bf16.mxu1 %v4397_v0  ;;  %v3878_v22 = vpack.c.bf16 %v2883_v20, %v2882_v19  ;;  %v2918_v19 = vld [vmem:[%s5454_s4 + $0x148] sm:$0xf] }
 0x190   : > { %3845 = vmatpush3.bf16.msra.mxu1 %v3844_v23  ;;  %v2884_v23 = vld [vmem:[%s5454_s4 + $0x90] sm:$0xff] }
 0x191   : > { %3896 = vmatprep.subr.bf16.mxu1 %v4397_v0 }
 0x193   : > { %3350 = vmatmul.mubr.msk.f32.vlgmr.msra.gmra.mrb[6].mxu1 %vm770_vm2, %v741_v58  ;;  %v1185_v58 = vld [vmem:[%s5454_s4 + $0x40] sm:$0xff] }
 0x194   : > { %3352 = vmatprep.mubr.msk.f32.mxu1 %vm4398_vm0, %v4399_v1  ;;  %v3862_v60 = vpack.c.bf16 %v1186_v59, %v1185_v58  ;;  %v2909_v59 = vld [vmem:[%s5454_s4 + $0x100] sm:$0xff] }
 0x197   : > { %3353 = vmatmul.mubr.msk.f32.gmra.mrb[8].mxu1 %vm770_vm2, %v746_v63  ;;  %v3865_v63 = vpack.c.bf16 %v1188_v62, %v1187_v61 }
 0x198   : > { %3355 = vmatprep.mubr.msk.f32.mxu1 %vm4398_vm0, %v4399_v1 }
 0x19b   : > { %3356 = vmatmul.mubr.msk.f32.gmra.mrb[10].mxu1 %vm770_vm2, %v751_v6  ;;  %v4910_v6 = vld [vmem:[%s5452_s2 + $0x30] sm:$0xff] }
 0x19c   : > { %3468 = vmatprep.mubr.msk.f32.mxu1 %vm4398_vm0, %v4399_v1 }
 0x266   : > { %v1056_v25 = vpop.f32.mrb[6].mxu1 }
 0x267   : > { %v3351_v26 = vpop.f32.mrb[7].mxu1  ;;  %v4064_v28 = vadd.f32 %v1056_v25, %v755_v24  ;;  %v2885_v24 = vld [vmem:[%s5454_s4 + $0x98] sm:$0xff]  ;;  %v4988_v25 = vld [vmem:[%s5452_s2 + $0x28] sm:$0x3] }
 0x268   : > { %v3881_v26 = vpack.c.bf16 %v2885_v24, %v2884_v23 }
 0x269   : > { %v1073_v33 = vmax.f32 %v4064_v28, 0.0  ;;  %v2887_v28 = vld [vmem:[%s5454_s4 + $0xa8] sm:$0xff] }
 0x26a   : > { %v1061_v29 = vpop.f32.mrb[8].mxu1 }
 0x26b   : > { %v4065_v30 = vadd.f32 %v1061_v29, %v756_v27  ;;  %v3354_v31 = vpop.f32.mrb[9].mxu1  ;;  %v2886_v27 = vld [vmem:[%s5454_s4 + $0xa0] sm:$0xff] }
 0x26c   : > { %v3884_v29 = vpack.c.bf16 %v2887_v28, %v2886_v27  ;;  %v2889_v31 = vld [vmem:[%s5454_s4 + $0xb8] sm:$0xff] }
 0x26d   : > { %v1074_v34 = vmax.f32 %v4065_v30, 0.0  ;;  %v2888_v30 = vld [vmem:[%s5454_s4 + $0xb0] sm:$0xff] }
 0x26e   : > { %v1066_v35 = vpop.f32.mrb[10].mxu1 }
 0x26f   : > { %v4811_v36 = vpack.c.bf16 %v1074_v34, %v1073_v33  ;;  %v4066_v37 = vadd.f32 %v1066_v35, %v757_v32  ;;  %v3357_v39 = vpop.f32.mrb[11].mxu1  ;;  %v3887_v32 = vpack.c.bf16 %v2889_v31, %v2888_v30  ;;  %v2890_v33 = vld [vmem:[%s5454_s4 + $0xc0] sm:$0xff]  ;;  %v2891_v34 = vld [vmem:[%s5454_s4 + $0xc8] sm:$0xff] }
 0x270   : > { %v3890_v35 = vpack.c.bf16 %v2891_v34, %v2890_v33  ;;  %v2864_v31 = vld [vmem:[%s5457_s7 + $0x28] sm:$0x3] }
 0x271   : > { %3848 = vmatpush3.bf16.msra.mxu0 %v4811_v36  ;;  %3898 = vmatpush3.bf16.msra.mxu1 %v4811_v36  ;;  %v4823_v42 = vmax.f32 %v4066_v37, 0.0  ;;  %v2893_v37 = vld [vmem:[%s5454_s4 + $0xd8] sm:$0xf] }
 0x272   : > { %3362 = vmatprep.subr.mxu0 %v4399_v1  ;;  %3466 = vmatprep.subr.mxu1 %v4399_v1 }
 0x275   : > { %3363 = vmatpush3.msk.msra.mxu0 %vm1093_vm3, %v4823_v42  ;;  %3467 = vmatpush3.msk.msra.mxu1 %vm1093_vm3, %v4823_v42 }
 0x276   : > { %3365 = vmatmul.mubr.msk.f32.vlgmr.msra.gmra.mrb[12].mxu0 %vm1083_vm4, %v4828_v43  ;;  %3849 = vmatprep.subr.bf16.mxu0 %v4397_v0 }
 0x277   : > { %3367 = vmatprep.mubr.msk.f32.mxu0 %vm4398_vm0, %v4399_v1  ;;  %3851 = vmatpush3.bf16.msra.mxu0 %v3850_v44 }
 0x278   : > { %3852 = vmatprep.subr.bf16.mxu0 %v4397_v0  ;;  %3921 = vmatprep.subr.bf16.mxu1 %v4397_v0 }
 0x279   : > { %3469 = vmatmul.mubr.msk.f32.vlgmr.msra.gmra.mrb[12].mxu1 %vm1083_vm4, %v4910_v6 }
 0x27a   : > { %3368 = vmatmul.mubr.msk.f32.gmra.mrb[14].mxu0 %vm1083_vm4, %v4848_v48  ;;  %3471 = vmatprep.mubr.msk.f32.mxu1 %vm4398_vm0, %v4399_v1 }
 0x27b   : > { %3370 = vmatprep.mubr.msk.f32.mxu0 %vm4398_vm0, %v4399_v1  ;;  %3854 = vmatpush3.bf16.msra.mxu0 %v3853_v49  ;;  %v2905_v49 = vld [vmem:[%s5454_s4 + $0xe0] sm:$0xff] }
 0x27c   : > { %3855 = vmatprep.subr.bf16.mxu0 %v4397_v0  ;;  %v3900_v51 = vpack.c.bf16 %v2906_v50, %v2905_v49  ;;  %v1791_v49 = vld [vmem:[#allocation7 + $0x38] sm:$0xff]  ;;  %v1793_v50 = vld [vmem:[#allocation7 + $0x48] sm:$0xff] }
 0x27d   : > { %3472 = vmatmul.mubr.msk.f32.gmra.mrb[14].mxu1 %vm1083_vm4, %v4919_v7 }
 0x27e   : > { %3371 = vmatmul.mubr.msk.f32.gmra.mrb[16].mxu0 %vm1083_vm4, %v4865_v53  ;;  %3474 = vmatprep.mubr.msk.f32.mxu1 %vm4398_vm0, %v4399_v1 }
 0x27f   : > { %3857 = vmatpush3.bf16.msra.mxu0 %v3856_v54  ;;  %3401 = vmatprep.mubr.msk.f32.mxu0 %vm4398_vm0, %v4399_v1  ;;  %v2907_v54 = vld [vmem:[%s5454_s4 + $0xf0] sm:$0xff] }
 0x280   : > { %3858 = vmatprep.subr.bf16.mxu0 %v4397_v0  ;;  %v3903_v58 = vpack.c.bf16 %v2908_v55, %v2907_v54  ;;  %v1795_v54 = vld [vmem:[#allocation7 + $0x58] sm:$0xff] }
 0x281   : > { %3475 = vmatmul.mubr.msk.f32.gmra.mrb[16].mxu1 %vm1083_vm4, %v4928_v8 }
 0x282   : > { %3520 = vmatprep.mubr.msk.f32.mxu1 %vm4398_vm0, %v4399_v1 }
 0x283   : > { %3860 = vmatpush3.bf16.msra.mxu0 %v3859_v57 }
 0x284   : > { %3861 = vmatprep.subr.bf16.mxu0 %v4397_v0 }
 0x287   : > { %3863 = vmatpush3.bf16.msra.mxu0 %v3862_v60  ;;  %v2910_v60 = vld [vmem:[%s5454_s4 + $0x108] sm:$0xff] }
 0x288   : > { %3864 = vmatprep.subr.bf16.mxu0 %v4397_v0 }
 0x28b   : > { %3866 = vmatpush3.bf16.msra.mxu0 %v3865_v63  ;;  %v3906_v63 = vpack.c.bf16 %v2910_v60, %v2909_v59  ;;  %v1976_v60 = vld [vmem:[#allocation7 + $0x80] sm:$0xff] }
 0x28c   : > { %3867 = vmatprep.subr.bf16.mxu0 %v4397_v0 }
 0x28f   : > { %3870 = vmatpush3.bf16.msk.msra.mxu0 %vm4900_vm7, %v3868_v4 }
 0x290   : > { %3871 = vmatprep.subr.bf16.mxu0 %v4397_v0 }
 0x349   : > { %v1163_v9 = vpop.f32.mrb[12].mxu0 }
 0x34a   : > { %v3366_v10 = vpop.f32.mrb[13].mxu0  ;;  %3402 = vmatmul.mubr.msk.f32.vlgmr.msra.gmra.mrb[18].mxu0 %vm1191_vm8, %v1163_v9 }
 0x34b   : > { %3873 = vmatpush3.bf16.msra.mxu0 %v4811_v36  ;;  %3404 = vmatprep.mubr.msk.f32.mxu0 %vm4398_vm0, %v4399_v1  ;;  %v2892_v36 = vld [vmem:[%s5454_s4 + $0xd0] sm:$0xff]  ;;  %v3909_v10 = vpack.c.bf16 %v2912_v3, %v2911_v2 }
 0x34c   : > { %3414 = vmatprep.subr.mxu0 %v4399_v1  ;;  %v3893_v39 = vpack.c.bf16 %v2893_v37, %v2892_v36  ;;  %v1570_v40 = vpop.f32.mrb[12].mxu1 }
 0x34d   : > { %v1168_v11 = vpop.f32.mrb[14].mxu0  ;;  %v3470_v41 = vpop.f32.mrb[13].mxu1 }
 0x34e   : > { %v3369_v12 = vpop.f32.mrb[15].mxu0  ;;  %3405 = vmatmul.mubr.msk.f32.gmra.mrb[20].mxu0 %vm1191_vm8, %v1168_v11  ;;  %v2913_v11 = vld [vmem:[%s5454_s4 + $0x120] sm:$0xff]  ;;  %v1785_v41 = vld [vmem:[#allocation7 + $0x8] sm:$0xff] }
 0x34f   : > { %3415 = vmatpush3.msk.msra.mxu0 %vm1093_vm3, %v4823_v42  ;;  %3407 = vmatprep.mubr.msk.f32.mxu0 %vm4398_vm0, %v4399_v1  ;;  %v2914_v12 = vld [vmem:[%s5454_s4 + $0x128] sm:$0xff] }
 0x350   : > { %3874 = vmatprep.subr.bf16.mxu0 %v4397_v0  ;;  %v1575_v42 = vpop.f32.mrb[14].mxu1  ;;  %v3912_v13 = vpack.c.bf16 %v2914_v12, %v2913_v11 }
 0x351   : > { %v1173_v15 = vpop.f32.mrb[16].mxu0  ;;  %v3473_v44 = vpop.f32.mrb[15].mxu1 }
 0x352   : > { %v3372_v16 = vpop.f32.mrb[17].mxu0  ;;  %3408 = vmatmul.mubr.msk.f32.gmra.mrb[22].mxu0 %vm1191_vm8, %v1173_v15  ;;  %v2916_v15 = vld [vmem:[%s5454_s4 + $0x138] sm:$0xff] }
 0x353   : > { %3416 = vmatprep.mubr.msk.f32.mxu0 %vm4398_vm0, %v4399_v1  ;;  %v3915_v16 = vpack.c.bf16 %v2916_v15, %v2915_v14  ;;  %v1787_v44 = vld [vmem:[#allocation7 + $0x18] sm:$0xff] }
 0x354   : > { %v1580_v46 = vpop.f32.mrb[16].mxu1 }
 0x355   : > { %v3476_v47 = vpop.f32.mrb[17].mxu1 }
 0x356   : > { %3417 = vmatmul.mubr.msk.f32.vlgmr.msra.gmra.mrb[24].mxu0 %vm1083_vm4, %v4957_v17  ;;  %v1790_v47 = vld [vmem:[#allocation7 + $0x30] sm:$0xff] }
 0x357   : > { %3419 = vmatprep.mubr.msk.f32.mxu0 %vm4398_vm0, %v4399_v1  ;;  %3876 = vmatpush3.bf16.msra.mxu0 %v3875_v18  ;;  %v2917_v18 = vld [vmem:[%s5454_s4 + $0x140] sm:$0xff] }
 0x358   : > { %3877 = vmatprep.subr.bf16.mxu0 %v4397_v0  ;;  %v3918_v20 = vpack.c.bf16 %v2918_v19, %v2917_v18  ;;  %v1981_v18 = vld [vmem:[#allocation7 + $0xa8] sm:$0xff] }
 0x35a   : > { %3420 = vmatmul.mubr.msk.f32.gmra.mrb[26].mxu0 %vm1083_vm4, %v4972_v21 }
 0x35b   : > { %3422 = vmatprep.mubr.msk.f32.mxu0 %vm4398_vm0, %v4399_v1  ;;  %3879 = vmatpush3.bf16.msra.mxu0 %v3878_v22  ;;  %v2862_v22 = vld [vmem:[%s5457_s7 + $0x18] sm:$0xff] }
 0x35c   : > { %3880 = vmatprep.subr.bf16.mxu0 %v4397_v0 }
 0x35e   : > { %3423 = vmatmul.mubr.msk.f32.gmra.mrb[28].mxu0 %vm1083_vm4, %v4988_v25 }
 0x35f   : > { %3882 = vmatpush3.bf16.msra.mxu0 %v3881_v26  ;;  %3453 = vmatprep.mubr.msk.f32.mxu0 %vm4398_vm0, %v4399_v1  ;;  %v2863_v26 = vld [vmem:[%s5457_s7 + $0x20] sm:$0xff] }
 0x360   : > { %3883 = vmatprep.subr.bf16.mxu0 %v4397_v0 }
 0x363   : > { %3885 = vmatpush3.bf16.msra.mxu0 %v3884_v29 }
 0x364   : > { %3886 = vmatprep.subr.bf16.mxu0 %v4397_v0 }
 0x367   : > { %3888 = vmatpush3.bf16.msra.mxu0 %v3887_v32 }
 0x368   : > { %3889 = vmatprep.subr.bf16.mxu0 %v4397_v0 }
 0x36b   : > { %3891 = vmatpush3.bf16.msra.mxu0 %v3890_v35 }
 0x36c   : > { %3892 = vmatprep.subr.bf16.mxu0 %v4397_v0 }
 0x36f   : > { %3895 = vmatpush3.bf16.msk.msra.mxu0 %vm4900_vm7, %v3893_v39 }
 0x370   : > { %3899 = vmatprep.subr.bf16.mxu0 %v4397_v0 }
 0x429   : > { %v1367_v56 = vpop.f32.mrb[24].mxu0 }
 0x42a   : > { %v3418_v57 = vpop.f32.mrb[25].mxu0  ;;  %3454 = vmatmul.mubr.msk.f32.vlgmr.msra.gmra.mrb[18].mxu0 %vm1191_vm8, %v1367_v56  ;;  %v1797_v56 = vld [vmem:[#allocation7 + $0x68] sm:$0xf] }
 0x42b   : > { %3901 = vmatpush3.bf16.msra.mxu0 %v3900_v51  ;;  %3456 = vmatprep.mubr.msk.f32.mxu0 %vm4398_vm0, %v4399_v1 }
 0x42c   : > { %3902 = vmatprep.subr.bf16.mxu0 %v4397_v0 }
 0x42d   : > { %v1372_v61 = vpop.f32.mrb[26].mxu0 }
 0x42e   : > { %v3421_v62 = vpop.f32.mrb[27].mxu0  ;;  %3457 = vmatmul.mubr.msk.f32.gmra.mrb[20].mxu0 %vm1191_vm8, %v1372_v61  ;;  %v1977_v61 = vld [vmem:[#allocation7 + $0x88] sm:$0xff] }
 0x42f   : > { %3904 = vmatpush3.bf16.msra.mxu0 %v3903_v58  ;;  %3459 = vmatprep.mubr.msk.f32.mxu0 %vm4398_vm0, %v4399_v1  ;;  %v1974_v58 = vld [vmem:[#allocation7 + $0x70] sm:$0xff]  ;;  %v3953_v3 = vpack.c.bf16 %v1977_v61, %v1976_v60  ;;  %v2278_v60 = vld [vmem:[%s5456_s6 + $0x8] sm:$0xff] }
 0x430   : > { %3905 = vmatprep.subr.bf16.mxu0 %v4397_v0 }
 0x431   : > { %v1377_v4 = vpop.f32.mrb[28].mxu0 }
 0x432   : > { %v3424_v9 = vpop.f32.mrb[29].mxu0  ;;  %3460 = vmatmul.mubr.msk.f32.gmra.mrb[22].mxu0 %vm1191_vm8, %v1377_v4 }
 0x433   : > { %3907 = vmatpush3.bf16.msra.mxu0 %v3906_v63  ;;  %3505 = vmatprep.mubr.msk.f32.mxu0 %vm4398_vm0, %v4399_v1  ;;  %v1978_v9 = vld [vmem:[#allocation7 + $0x90] sm:$0xff] }
 0x434   : > { %3908 = vmatprep.subr.bf16.mxu0 %v4397_v0 }
 0x437   : > { %3910 = vmatpush3.bf16.msra.mxu0 %v3909_v10  ;;  %v1979_v10 = vld [vmem:[#allocation7 + $0x98] sm:$0xff] }
 0x438   : > { %3911 = vmatprep.subr.bf16.mxu0 %v4397_v0  ;;  %v3956_v14 = vpack.c.bf16 %v1979_v10, %v1978_v9  ;;  %v2283_v10 = vld [vmem:[%s5456_s6 + $0x30] sm:$0xff] }
 0x43b   : > { %3913 = vmatpush3.bf16.msra.mxu0 %v3912_v13 }
 0x43c   : > { %3914 = vmatprep.subr.bf16.mxu0 %v4397_v0 }
 0x43f   : > { %3916 = vmatpush3.bf16.msra.mxu0 %v3915_v16  ;;  %v1980_v16 = vld [vmem:[#allocation7 + $0xa0] sm:$0xff] }
 0x440   : > { %3917 = vmatprep.subr.bf16.mxu0 %v4397_v0 }
 0x443   : > { %3920 = vmatpush3.bf16.msk.msra.mxu0 %vm4900_vm7, %v3918_v20 }
 0x444   : > { %3946 = vmatprep.subr.bf16.mxu0 %v4397_v0 }
 0x446   : > { %3506 = vmatmul.mubr.msk.f32.vlgmr.msra.gmra.mrb[18].mxu0 %vm1191_vm8, %v1570_v40  ;;  %v1784_v40 = vld [vmem:[#allocation7] sm:$0xff] }
 0x447   : > { %3508 = vmatprep.mubr.msk.f32.mxu0 %vm4398_vm0, %v4399_v1 }
 0x44a   : > { %3509 = vmatmul.mubr.msk.f32.gmra.mrb[20].mxu0 %vm1191_vm8, %v1575_v42  ;;  %v3925_v42 = vpack.c.bf16 %v1785_v41, %v1784_v40 }
 0x44b   : > { %3511 = vmatprep.mubr.msk.f32.mxu0 %vm4398_vm0, %v4399_v1 }
 0x44e   : > { %3512 = vmatmul.mubr.msk.f32.gmra.mrb[22].mxu0 %vm1191_vm8, %v1580_v46  ;;  %v1789_v46 = vld [vmem:[#allocation7 + $0x28] sm:$0xff] }
 0x44f   : > { %3572 = vmatprep.mubr.msk.f32.mxu0 %vm4398_vm0, %v4399_v1 }
 0x519   : > { %v1677_v23 = vpop.f32.mrb[18].mxu0 }
 0x51a   : > { %v3507_v24 = vpop.f32.mrb[19].mxu0  ;;  %v4067_v27 = vadd.f32 %v2862_v22, %v1677_v23  ;;  %v3959_v23 = vpack.c.bf16 %v1981_v18, %v1980_v16  ;;  %v2287_v16 = vld [vmem:[%s5456_s6 + $0x50] sm:$0xff]  ;;  %v2288_v18 = vld [vmem:[%s5456_s6 + $0x58] sm:$0xff] }
 0x51c   : > { %v1694_v32 = vmax.f32 %v4067_v27, 0.0  ;;  %v1983_v27 = vld [vmem:[#allocation7 + $0xb8] sm:$0xff] }
 0x51d   : > { %v1682_v28 = vpop.f32.mrb[20].mxu0 }
 0x51e   : > { %v4068_v29 = vadd.f32 %v2863_v26, %v1682_v28  ;;  %v3510_v30 = vpop.f32.mrb[21].mxu0  ;;  %v1982_v26 = vld [vmem:[#allocation7 + $0xb0] sm:$0xff] }
 0x520   : > { %v1695_v33 = vmax.f32 %v4068_v29, 0.0  ;;  %v3962_v29 = vpack.c.bf16 %v1983_v27, %v1982_v26  ;;  %v2925_v27 = vld [vmem:[%s5457_s7 + $0x40] sm:$0x3] }
 0x521   : > { %v1687_v34 = vpop.f32.mrb[22].mxu0 }
 0x522   : > { %v3922_v35 = vpack.c.bf16 %v1695_v33, %v1694_v32  ;;  %v4069_v36 = vadd.f32 %v2864_v31, %v1687_v34  ;;  %v3513_v37 = vpop.f32.mrb[23].mxu0  ;;  %v1984_v31 = vld [vmem:[#allocation7 + $0xc0] sm:$0xff]  ;;  %v1985_v32 = vld [vmem:[#allocation7 + $0xc8] sm:$0xff] }
 0x523   : > { %v3965_v34 = vpack.c.bf16 %v1985_v32, %v1984_v31  ;;  %v1987_v37 = vld [vmem:[#allocation7 + $0xd8] sm:$0xf] }
 0x524   : > { %3923 = vmatpush3.bf16.msra.mxu1 %v3922_v35  ;;  %3948 = vmatpush3.bf16.msra.mxu0 %v3922_v35  ;;  %v1696_v39 = vmax.f32 %v4069_v36, 0.0  ;;  %v1986_v36 = vld [vmem:[#allocation7 + $0xd0] sm:$0xff] }
 0x525   : > { %3518 = vmatprep.subr.mxu1 %v4399_v1  ;;  %3570 = vmatprep.subr.mxu0 %v4399_v1  ;;  %v3968_v40 = vpack.c.bf16 %v1987_v37, %v1986_v36 }
 0x528   : > { %3519 = vmatpush3.msk.msra.mxu1 %vm1093_vm3, %v1696_v39  ;;  %3571 = vmatpush3.msk.msra.mxu0 %vm1093_vm3, %v1696_v39 }
 0x529   : > { %3521 = vmatmul.mubr.msk.f32.vlgmr.msra.gmra.mrb[18].mxu1 %vm1083_vm4, %v4828_v43  ;;  %3971 = vmatprep.subr.bf16.mxu0 %v4397_v0  ;;  %v1786_v43 = vld [vmem:[#allocation7 + $0x10] sm:$0xff] }
 0x52a   : > { %3573 = vmatmul.mubr.msk.f32.vlgmr.msra.gmra.mrb[30].mxu0 %vm1083_vm4, %v4957_v17  ;;  %3523 = vmatprep.mubr.msk.f32.mxu1 %vm4398_vm0, %v4399_v1  ;;  %v3928_v17 = vpack.c.bf16 %v1787_v44, %v1786_v43  ;;  %v2165_v43 = vld [vmem:[#allocation7 + $0xe8] sm:$0xff] }
 0x52b   : > { %3973 = vmatpush3.bf16.msra.mxu0 %v3922_v35  ;;  %3575 = vmatprep.mubr.msk.f32.mxu0 %vm4398_vm0, %v4399_v1 }
 0x52c   : > { %3622 = vmatprep.subr.mxu0 %v4399_v1  ;;  %3924 = vmatprep.subr.bf16.mxu1 %v4397_v0 }
 0x52d   : > { %3524 = vmatmul.mubr.msk.f32.gmra.mrb[20].mxu1 %vm1083_vm4, %v4848_v48  ;;  %v1788_v48 = vld [vmem:[#allocation7 + $0x20] sm:$0xff] }
 0x52e   : > { %3526 = vmatprep.mubr.msk.f32.mxu1 %vm4398_vm0, %v4399_v1  ;;  %3576 = vmatmul.mubr.msk.f32.gmra.mrb[32].mxu0 %vm1083_vm4, %v4972_v21  ;;  %v3931_v21 = vpack.c.bf16 %v1789_v46, %v1788_v48  ;;  %v2167_v48 = vld [vmem:[#allocation7 + $0xf8] sm:$0xff] }
 0x52f   : > { %3623 = vmatpush3.msk.msra.mxu0 %vm1093_vm3, %v1696_v39  ;;  %3578 = vmatprep.mubr.msk.f32.mxu0 %vm4398_vm0, %v4399_v1 }
 0x530   : > { %3926 = vmatpush3.bf16.msra.mxu1 %v3925_v42  ;;  %4017 = vmatprep.subr.bf16.mxu0 %v4397_v0  ;;  %v2164_v42 = vld [vmem:[#allocation7 + $0xe0] sm:$0xff] }
 0x531   : > { %3527 = vmatmul.mubr.msk.f32.gmra.mrb[22].mxu1 %vm1083_vm4, %v4865_v53  ;;  %3927 = vmatprep.subr.bf16.mxu1 %v4397_v0  ;;  %v3934_v53 = vpack.c.bf16 %v1791_v49, %v1790_v47  ;;  %v3975_v44 = vpack.c.bf16 %v2165_v43, %v2164_v42  ;;  %v2169_v47 = vld [vmem:[#allocation7 + $0x108] sm:$0xff] }
 0x532   : > { %3579 = vmatmul.mubr.msk.f32.gmra.mrb[34].mxu0 %vm1083_vm4, %v4988_v25  ;;  %3557 = vmatprep.mubr.msk.f32.mxu1 %vm4398_vm0, %v4399_v1  ;;  %v1792_v25 = vld [vmem:[#allocation7 + $0x40] sm:$0xff]  ;;  %v2531_v42 = vld [vmem:[%s5493_s19 + $0x8] sm:$0xff] }
 0x533   : > { %3624 = vmatprep.mubr.msk.f32.mxu0 %vm4398_vm0, %v4399_v1  ;;  %v3937_v51 = vpack.c.bf16 %v1793_v50, %v1792_v25  ;;  %v2171_v25 = vld [vmem:[#allocation7 + $0x118] sm:$0xff] }
 0x534   : > { %3929 = vmatpush3.bf16.msra.mxu1 %v3928_v17  ;;  %v2166_v17 = vld [vmem:[#allocation7 + $0xf0] sm:$0xff] }
 0x535   : > { %3930 = vmatprep.subr.bf16.mxu1 %v4397_v0  ;;  %v3978_v46 = vpack.c.bf16 %v2167_v48, %v2166_v17  ;;  %v2455_v17 = vld [vmem:[#allocation8] sm:$0xff] }
 0x536   : > { %3625 = vmatmul.mubr.msk.f32.vlgmr.msra.gmra.mrb[36].mxu0 %vm1083_vm4, %v4910_v6  ;;  %v1794_v6 = vld [vmem:[#allocation7 + $0x50] sm:$0xff] }
 0x537   : > { %3627 = vmatprep.mubr.msk.f32.mxu0 %vm4398_vm0, %v4399_v1  ;;  %v3940_v55 = vpack.c.bf16 %v1795_v54, %v1794_v6  ;;  %v2173_v6 = vld [vmem:[#allocation7 + $0x128] sm:$0xff] }
 0x538   : > { %3932 = vmatpush3.bf16.msra.mxu1 %v3931_v21  ;;  %v2168_v21 = vld [vmem:[#allocation7 + $0x100] sm:$0xff] }
 0x539   : > { %3933 = vmatprep.subr.bf16.mxu1 %v4397_v0  ;;  %v3981_v49 = vpack.c.bf16 %v2169_v47, %v2168_v21  ;;  %v2533_v21 = vld [vmem:[%s5493_s19 + $0x18] sm:$0xff] }
 0x53a   : > { %3628 = vmatmul.mubr.msk.f32.gmra.mrb[38].mxu0 %vm1083_vm4, %v4919_v7  ;;  %v1796_v7 = vld [vmem:[#allocation7 + $0x60] sm:$0xff] }
 0x53b   : > { %3630 = vmatprep.mubr.msk.f32.mxu0 %vm4398_vm0, %v4399_v1  ;;  %v3943_v57 = vpack.c.bf16 %v1797_v56, %v1796_v7  ;;  %v2175_v7 = vld [vmem:[#allocation7 + $0x138] sm:$0xff] }
 0x53c   : > { %3935 = vmatpush3.bf16.msra.mxu1 %v3934_v53  ;;  %v2170_v53 = vld [vmem:[#allocation7 + $0x110] sm:$0xff] }
 0x53d   : > { %3936 = vmatprep.subr.bf16.mxu1 %v4397_v0  ;;  %v3984_v50 = vpack.c.bf16 %v2171_v25, %v2170_v53  ;;  %v2535_v53 = vld [vmem:[%s5493_s19 + $0x28] sm:$0xff] }
 0x53e   : > { %3631 = vmatmul.mubr.msk.f32.gmra.mrb[40].mxu0 %vm1083_vm4, %v4928_v8  ;;  %v1975_v8 = vld [vmem:[#allocation7 + $0x78] sm:$0xff] }
 0x53f   : > { %3718 = vmatprep.mubr.msk.f32.mxu0 %vm4398_vm0, %v4399_v1  ;;  %v3950_v59 = vpack.c.bf16 %v1975_v8, %v1974_v58  ;;  %v2177_v58 = vld [vmem:[#allocation7 + $0x148] sm:$0xf] }
 0x540   : > { %3938 = vmatpush3.bf16.msra.mxu1 %v3937_v51  ;;  %v2172_v51 = vld [vmem:[#allocation7 + $0x120] sm:$0xff] }
 0x541   : > { %3939 = vmatprep.subr.bf16.mxu1 %v4397_v0  ;;  %v3987_v54 = vpack.c.bf16 %v2173_v6, %v2172_v51  ;;  %v2537_v51 = vld [vmem:[%s5493_s19 + $0x38] sm:$0xff] }
 0x544   : > { %3941 = vmatpush3.bf16.msra.mxu1 %v3940_v55  ;;  %v2174_v55 = vld [vmem:[#allocation7 + $0x130] sm:$0xff] }
 0x545   : > { %3942 = vmatprep.subr.bf16.mxu1 %v4397_v0  ;;  %v3990_v56 = vpack.c.bf16 %v2175_v7, %v2174_v55  ;;  %v2539_v55 = vld [vmem:[%s5493_s19 + $0x48] sm:$0xff] }
 0x548   : > { %3945 = vmatpush3.bf16.msk.msra.mxu1 %vm4900_vm7, %v3943_v57  ;;  %v2176_v57 = vld [vmem:[#allocation7 + $0x140] sm:$0xff] }
 0x549   : > { %3949 = vmatprep.subr.bf16.mxu1 %v4397_v0  ;;  %v3993_v8 = vpack.c.bf16 %v2177_v58, %v2176_v57  ;;  %v2541_v57 = vld [vmem:[%s5493_s19 + $0x58] sm:$0xff] }
 0x5fc   : > { %v1770_v62 = vpop.f32.mrb[18].mxu1 }
 0x5fd   : > { %v3522_v63 = vpop.f32.mrb[19].mxu1  ;;  %3558 = vmatmul.mubr.msk.f32.vlgmr.msra.gmra.mrb[24].mxu1 %vm1191_vm8, %v1770_v62  ;;  %v1959_v2 = vpop.f32.mrb[30].mxu0  ;;  %v2279_v62 = vld [vmem:[%s5456_s6 + $0x10] sm:$0xff] }
 0x5fe   : > { %3951 = vmatpush3.bf16.msra.mxu1 %v3950_v59  ;;  %3560 = vmatprep.mubr.msk.f32.mxu1 %vm4398_vm0, %v4399_v1  ;;  %v3574_v4 = vpop.f32.mrb[31].mxu0  ;;  %v2277_v59 = vld [vmem:[%s5456_s6] sm:$0xff]  ;;  %v2280_v63 = vld [vmem:[%s5456_s6 + $0x18] sm:$0xff] }
 0x5ff   : > { %3952 = vmatprep.subr.bf16.mxu1 %v4397_v0  ;;  %v3997_v61 = vpack.c.bf16 %v2278_v60, %v2277_v59  ;;  %v2282_v4 = vld [vmem:[%s5456_s6 + $0x28] sm:$0xff] }
 0x600   : > { %v1775_v11 = vpop.f32.mrb[20].mxu1  ;;  %v2543_v59 = vld [vmem:[%s5493_s19 + $0x68] sm:$0xf] }
 0x601   : > { %v3525_v12 = vpop.f32.mrb[21].mxu1  ;;  %3561 = vmatmul.mubr.msk.f32.gmra.mrb[26].mxu1 %vm1191_vm8, %v1775_v11  ;;  %v1964_v13 = vpop.f32.mrb[32].mxu0  ;;  %v2284_v11 = vld [vmem:[%s5456_s6 + $0x38] sm:$0xff] }
 0x602   : > { %3954 = vmatpush3.bf16.msra.mxu1 %v3953_v3  ;;  %3563 = vmatprep.mubr.msk.f32.mxu1 %vm4398_vm0, %v4399_v1  ;;  %v3577_v15 = vpop.f32.mrb[33].mxu0  ;;  %v2281_v3 = vld [vmem:[%s5456_s6 + $0x20] sm:$0xff]  ;;  %v4006_v12 = vpack.c.bf16 %v2284_v11, %v2283_v10  ;;  %v2622_v11 = vld [vmem:[%s5495_s30 + $0x10] sm:$0xff] }
 0x603   : > { %3955 = vmatprep.subr.bf16.mxu1 %v4397_v0  ;;  %v4003_v9 = vpack.c.bf16 %v2282_v4, %v2281_v3 }
 0x604   : > { %v1780_v19 = vpop.f32.mrb[22].mxu1 }
 0x605   : > { %v3528_v20 = vpop.f32.mrb[23].mxu1  ;;  %3564 = vmatmul.mubr.msk.f32.gmra.mrb[28].mxu1 %vm1191_vm8, %v1780_v19  ;;  %v1969_v22 = vpop.f32.mrb[34].mxu0  ;;  %v4012_v19 = vpack.c.bf16 %v2288_v18, %v2287_v16  ;;  %v2626_v18 = vld [vmem:[%s5495_s30 + $0x30] sm:$0xff] }
 0x606   : > { %3957 = vmatpush3.bf16.msra.mxu1 %v3956_v14  ;;  %3609 = vmatprep.mubr.msk.f32.mxu1 %vm4398_vm0, %v4399_v1  ;;  %v3580_v24 = vpop.f32.mrb[35].mxu0  ;;  %v2286_v14 = vld [vmem:[%s5456_s6 + $0x48] sm:$0xff]  ;;  %v2923_v20 = vld [vmem:[%s5457_s7 + $0x30] sm:$0xff] }
 0x607   : > { %3958 = vmatprep.subr.bf16.mxu1 %v4397_v0 }
 0x609   : > { %v5170_v28 = vpop.f32.mrb[36].mxu0 }
 0x60a   : > { %3960 = vmatpush3.bf16.msra.mxu1 %v3959_v23  ;;  %v3626_v30 = vpop.f32.mrb[37].mxu0 }
 0x60b   : > { %3961 = vmatprep.subr.bf16.mxu1 %v4397_v0 }
 0x60d   : > { %v5173_v33 = vpop.f32.mrb[38].mxu0 }
 0x60e   : > { %3963 = vmatpush3.bf16.msra.mxu1 %v3962_v29  ;;  %v3629_v35 = vpop.f32.mrb[39].mxu0 }
 0x60f   : > { %3964 = vmatprep.subr.bf16.mxu1 %v4397_v0 }
 0x611   : > { %v5176_v39 = vpop.f32.mrb[40].mxu0 }
 0x612   : > { %3966 = vmatpush3.bf16.msra.mxu1 %v3965_v34  ;;  %v3632_v41 = vpop.f32.mrb[41].mxu0 }
 0x613   : > { %3967 = vmatprep.subr.bf16.mxu1 %v4397_v0  ;;  %v2530_v41 = vld [vmem:[%s5493_s19] sm:$0xff] }
 0x614   : > { %v4021_v48 = vpack.c.bf16 %v2531_v42, %v2530_v41 }
 0x616   : > { %3970 = vmatpush3.bf16.msk.msra.mxu1 %vm4900_vm7, %v3968_v40 }
 0x617   : > { %3974 = vmatprep.subr.bf16.mxu1 %v4397_v0 }
 0x619   : > { %3610 = vmatmul.mubr.msk.f32.vlgmr.msra.gmra.mrb[24].mxu1 %vm1191_vm8, %v1959_v2  ;;  %v4000_v2 = vpack.c.bf16 %v2280_v63, %v2279_v62  ;;  %v2621_v62 = vld [vmem:[%s5495_s30 + $0x8] sm:$0xff] }
 0x61a   : > { %3976 = vmatpush3.bf16.msra.mxu1 %v3975_v44  ;;  %3612 = vmatprep.mubr.msk.f32.mxu1 %vm4398_vm0, %v4399_v1  ;;  %v2378_v44 = vld [vmem:[%s5494_s10] sm:$0xff]  ;;  %s4315_s10 = scalar_lea.vmem %s5408_s27, 128 }
 0x61b   : > { %3977 = vmatprep.subr.bf16.mxu1 %v4397_v0  ;;  %p4316_p10 = scmp.ne.s32.totalorder %s5408_s27, %s4315_s10  ;;  %p4323_p1 = scmp.lt.s32.totalorder %s4321_s17, %s4315_s10 }
 0x61d   : > { %3613 = vmatmul.mubr.msk.f32.gmra.mrb[26].mxu1 %vm1191_vm8, %v1964_v13  ;;  %v2285_v13 = vld [vmem:[%s5456_s6 + $0x40] sm:$0xff]  ;;  %p4317_p3 = pnand %p4316_p10, %p4618_p5  ;;  %p4324_p2 = por %p4323_p1, %p4322_p12 }
 0x61e   : > { %3979 = vmatpush3.bf16.msra.mxu1 %v3978_v46  ;;  %3615 = vmatprep.mubr.msk.f32.mxu1 %vm4398_vm0, %v4399_v1  ;;  %v4009_v15 = vpack.c.bf16 %v2286_v14, %v2285_v13  ;;  %v2532_v46 = vld [vmem:[%s5493_s19 + $0x10] sm:$0xff]  ;;  %v2624_v14 = vld [vmem:[%s5495_s30 + $0x20] sm:$0xff] }
 0x61f   : > { %3980 = vmatprep.subr.bf16.mxu1 %v4397_v0  ;;  %v4024_v47 = vpack.c.bf16 %v2533_v21, %v2532_v46  ;;  %p4318_p7 = pneg %p4317_p3 }
 0x621   : > { %3616 = vmatmul.mubr.msk.f32.gmra.mrb[28].mxu1 %vm1191_vm8, %v1969_v22  ;;  %v2951_v22 = vld [vmem:[%s5457_s7 + $0x50] sm:$0xff]  ;;  %p4325_p4 = pnand %p4324_p2, %p4318_p7 }
 0x622   : > { %3982 = vmatpush3.bf16.msra.mxu1 %v3981_v49  ;;  %3661 = vmatprep.mubr.msk.f32.mxu1 %vm4398_vm0, %v4399_v1  ;;  %v2534_v49 = vld [vmem:[%s5493_s19 + $0x20] sm:$0xff] }
 0x623   : > { %3983 = vmatprep.subr.bf16.mxu1 %v4397_v0  ;;  %v4027_v25 = vpack.c.bf16 %v2535_v53, %v2534_v49 }
 0x626   : > { %3985 = vmatpush3.bf16.msra.mxu1 %v3984_v50  ;;  %v2536_v50 = vld [vmem:[%s5493_s19 + $0x30] sm:$0xff] }
 0x627   : > { %3986 = vmatprep.subr.bf16.mxu1 %v4397_v0  ;;  %v4030_v6 = vpack.c.bf16 %v2537_v51, %v2536_v50 }
 0x62a   : > { %3988 = vmatpush3.bf16.msra.mxu1 %v3987_v54  ;;  %v2538_v54 = vld [vmem:[%s5493_s19 + $0x40] sm:$0xff] }
 0x62b   : > { %3989 = vmatprep.subr.bf16.mxu1 %v4397_v0  ;;  %v4033_v7 = vpack.c.bf16 %v2539_v55, %v2538_v54 }
 0x62e   : > { %3991 = vmatpush3.bf16.msra.mxu1 %v3990_v56  ;;  %v2540_v56 = vld [vmem:[%s5493_s19 + $0x50] sm:$0xff] }
 0x62f   : > { %3992 = vmatprep.subr.bf16.mxu1 %v4397_v0  ;;  %v4036_v58 = vpack.c.bf16 %v2541_v57, %v2540_v56 }
 0x632   : > { %3995 = vmatpush3.bf16.msk.msra.mxu1 %vm4900_vm7, %v3993_v8  ;;  %v2542_v8 = vld [vmem:[%s5493_s19 + $0x60] sm:$0xff] }
 0x633   : > { %3996 = vmatprep.subr.bf16.mxu1 %v4397_v0  ;;  %v4039_v60 = vpack.c.bf16 %v2543_v59, %v2542_v8 }
 0x635   : > { %3662 = vmatmul.mubr.msk.f32.vlgmr.msra.gmra.mrb[24].mxu1 %vm1191_vm8, %v5170_v28  ;;  %v2952_v28 = vld [vmem:[%s5457_s7 + $0x58] sm:$0x3] }
 0x636   : > { %3998 = vmatpush3.bf16.msra.mxu1 %v3997_v61  ;;  %3664 = vmatprep.mubr.msk.f32.mxu1 %vm4398_vm0, %v4399_v1  ;;  %v2620_v61 = vld [vmem:[%s5495_s30] sm:$0xff] }
 0x637   : > { %3999 = vmatprep.subr.bf16.mxu1 %v4397_v0  ;;  %v4043_v3 = vpack.c.bf16 %v2621_v62, %v2620_v61 }
 0x639   : > { %3665 = vmatmul.mubr.msk.f32.gmra.mrb[26].mxu1 %vm1191_vm8, %v5173_v33  ;;  %v4074_v33 = vadd.f32 %v2952_v28, %v2925_v27 }
 0x63a   : > { %4001 = vmatpush3.bf16.msra.mxu1 %v4000_v2  ;;  %3667 = vmatprep.mubr.msk.f32.mxu1 %vm4398_vm0, %v4399_v1 }
 0x63b   : > { %4002 = vmatprep.subr.bf16.mxu1 %v4397_v0 }
 0x63d   : > { %3668 = vmatmul.mubr.msk.f32.gmra.mrb[28].mxu1 %vm1191_vm8, %v5176_v39 }
 0x63e   : > { %4004 = vmatpush3.bf16.msra.mxu1 %v4003_v9  ;;  %3694 = vmatprep.mubr.msk.f32.mxu1 %vm4398_vm0, %v4399_v1 }
 0x63f   : > { %4005 = vmatprep.subr.bf16.mxu1 %v4397_v0 }
 0x642   : > { %4007 = vmatpush3.bf16.msra.mxu1 %v4006_v12  ;;  %v2623_v12 = vld [vmem:[%s5495_s30 + $0x18] sm:$0xff] }
 0x643   : > { %4008 = vmatprep.subr.bf16.mxu1 %v4397_v0  ;;  %v4046_v13 = vpack.c.bf16 %v2623_v12, %v2622_v11 }
 0x646   : > { %4010 = vmatpush3.bf16.msra.mxu1 %v4009_v15  ;;  %v2625_v15 = vld [vmem:[%s5495_s30 + $0x28] sm:$0xff] }
 0x647   : > { %4011 = vmatprep.subr.bf16.mxu1 %v4397_v0  ;;  %v4049_v16 = vpack.c.bf16 %v2625_v15, %v2624_v14 }
 0x64a   : > { %4013 = vmatpush3.bf16.msra.mxu1 %v4012_v19 }
 0x64b   : > { %4014 = vmatprep.subr.bf16.mxu1 %v4397_v0 }
 0x64d   : > { %3695 = vmatmul.mubr.msk.f32.vlgmr.msra.gmra.mrb[24].mxu1 %vm770_vm2, %v4754_v38  ;;  %v2950_v38 = vld [vmem:[%s5457_s7 + $0x48] sm:$0xff] }
 0x64e   : > { %3697 = vmatprep.mubr.msk.f32.mxu1 %vm4398_vm0, %v4399_v1 }
 0x651   : > { %3698 = vmatmul.mubr.msk.f32.gmra.mrb[26].mxu1 %vm770_vm2, %v4760_v45  ;;  %v2924_v45 = vld [vmem:[%s5457_s7 + $0x38] sm:$0xff] }
 0x652   : > { %3700 = vmatprep.mubr.msk.f32.mxu1 %vm4398_vm0, %v4399_v1  ;;  %v4072_v26 = vadd.f32 %v2951_v22, %v2924_v45  ;;  %v2630_v22 = vld [vmem:[%s5495_s30 + $0x50] sm:$0xff] }
 0x655   : > { %3701 = vmatmul.mubr.msk.f32.gmra.mrb[28].mxu1 %vm770_vm2, %v4766_v52  ;;  %v4070_v52 = vadd.f32 %v2950_v38, %v2923_v20  ;;  %v2628_v20 = vld [vmem:[%s5495_s30 + $0x40] sm:$0xff]  ;;  %v2629_v38 = vld [vmem:[%s5495_s30 + $0x48] sm:$0xff] }
 0x656   : > { %3709 = vmatprep.mubr.msk.f32.mxu1 %vm4398_vm0, %v4399_v1  ;;  %v4055_v45 = vpack.c.bf16 %v2629_v38, %v2628_v20 }
 0x720   : > { %v2355_v23 = vpop.f32.mrb[24].mxu1 }
 0x721   : > { %v3696_v24 = vpop.f32.mrb[25].mxu1  ;;  %v4071_v29 = vadd.f32 %v4070_v52, %v2355_v23  ;;  %v2631_v52 = vld [vmem:[%s5495_s30 + $0x58] sm:$0xff] }
 0x722   : > { %v4058_v23 = vpack.c.bf16 %v2631_v52, %v2630_v22  ;;  %v2632_v24 = vld [vmem:[%s5495_s30 + $0x60] sm:$0xff] }
 0x723   : > { %v2375_v34 = vmax.f32 %v4071_v29, 0.0 }
 0x724   : > { %v2360_v30 = vpop.f32.mrb[26].mxu1 }
 0x725   : > { %v4073_v31 = vadd.f32 %v4072_v26, %v2360_v30  ;;  %v3699_v32 = vpop.f32.mrb[27].mxu1  ;;  %v2633_v26 = vld [vmem:[%s5495_s30 + $0x68] sm:$0xf] }
 0x726   : > { %v4061_v27 = vpack.c.bf16 %v2633_v26, %v2632_v24 }
 0x727   : > { %v2376_v35 = vmax.f32 %v4073_v31, 0.0 }
 0x728   : > { %v2365_v36 = vpop.f32.mrb[28].mxu1 }
 0x729   : > { %v4015_v37 = vpack.c.bf16 %v2376_v35, %v2375_v34  ;;  %v4075_v39 = vadd.f32 %v4074_v33, %v2365_v36  ;;  %v3702_v40 = vpop.f32.mrb[29].mxu1 }
 0x72b   : > { %4016 = vmatpush3.bf16.msra.mxu1 %v4015_v37  ;;  %4019 = vmatpush3.bf16.msra.mxu0 %v4015_v37  ;;  %v2377_v43 = vmax.f32 %v4075_v39, 0.0 }
 0x72c   : > { %3707 = vmatprep.subr.mxu1 %v4399_v1  ;;  %3716 = vmatprep.subr.mxu0 %v4399_v1 }
 0x72f   : > { %3708 = vmatpush3.msk.msra.mxu1 %vm1093_vm3, %v2377_v43  ;;  %3717 = vmatpush3.msk.msra.mxu0 %vm1093_vm3, %v2377_v43 }
 0x730   : > { %3710 = vmatmul.mubr.msk.f32.vlgmr.msra.gmra.mrb[30].mxu1 %vm1083_vm4, %v2378_v44  ;;  %3719 = vmatmul.mubr.msk.f32.vlgmr.msra.gmra.mrb[42].mxu0 %vm1083_vm4, %v2455_v17 }
 0x731   : > { %4020 = vmatprep.subr.bf16.mxu0 %v4397_v0  ;;  %3749 = vmatprep.mubr.msk.f32.mxu0 %vm4398_vm0, %v4399_v1 }
 0x732   : > { %4022 = vmatpush3.bf16.msra.mxu0 %v4021_v48 }
 0x733   : > { %4023 = vmatprep.subr.bf16.mxu0 %v4397_v0 }
 0x736   : > { %4025 = vmatpush3.bf16.msra.mxu0 %v4024_v47 }
 0x737   : > { %4026 = vmatprep.subr.bf16.mxu0 %v4397_v0 }
 0x73a   : > { %4028 = vmatpush3.bf16.msra.mxu0 %v4027_v25 }
 0x73b   : > { %4029 = vmatprep.subr.bf16.mxu0 %v4397_v0 }
 0x73e   : > { %4031 = vmatpush3.bf16.msra.mxu0 %v4030_v6 }
 0x73f   : > { %4032 = vmatprep.subr.bf16.mxu0 %v4397_v0 }
 0x742   : > { %4034 = vmatpush3.bf16.msra.mxu0 %v4033_v7 }
 0x743   : > { %4035 = vmatprep.subr.bf16.mxu0 %v4397_v0 }
 0x746   : > { %4037 = vmatpush3.bf16.msra.mxu0 %v4036_v58 }
 0x747   : > { %4038 = vmatprep.subr.bf16.mxu0 %v4397_v0 }
 0x74a   : > { %4041 = vmatpush3.bf16.msk.msra.mxu0 %vm4900_vm7, %v4039_v60 }
 0x74b   : > { %4042 = vmatprep.subr.bf16.mxu0 %v4397_v0 }
 0x803   : > { %v2451_v63 = vpop.f32.mrb[30].mxu1  ;;  %v2525_v2 = vpop.f32.mrb[42].mxu0 }
 0x804   : > { %v2529_v4 = vmax.f32 %v2451_v63, %v2525_v2  ;;  %v3711_v9 = vpop.f32.mrb[31].mxu1  ;;  %v3720_v10 = vpop.f32.mrb[43].mxu0 }
 0x806   : > { %3750 = vmatmul.mubr.msk.f32.vlgmr.msra.gmra.mrb[44].mxu0 %vm1191_vm8, %v2529_v4 }
 0x807   : > { %4044 = vmatpush3.bf16.msra.mxu0 %v4043_v3  ;;  %3780 = vmatprep.mubr.msk.f32.mxu0 %vm4398_vm0, %v4399_v1  ;;  %v2627_v1 = vld [vmem:[%s5495_s30 + $0x38] sm:$0xff] }
 0x808   : > { %4045 = vmatprep.subr.bf16.mxu0 %v4397_v0  ;;  %v4052_v19 = vpack.c.bf16 %v2627_v1, %v2626_v18 }
 0x80b   : > { %4047 = vmatpush3.bf16.msra.mxu0 %v4046_v13 }
 0x80c   : > { %4048 = vmatprep.subr.bf16.mxu0 %v4397_v0 }
 0x80f   : > { %4050 = vmatpush3.bf16.msra.mxu0 %v4049_v16 }
 0x810   : > { %4051 = vmatprep.subr.bf16.mxu0 %v4397_v0 }
 0x813   : > { %4053 = vmatpush3.bf16.msra.mxu0 %v4052_v19 }
 0x814   : > { %4054 = vmatprep.subr.bf16.mxu0 %v4397_v0 }
 0x817   : > { %4056 = vmatpush3.bf16.msra.mxu0 %v4055_v45 }
 0x818   : > { %4057 = vmatprep.subr.bf16.mxu0 %v4397_v0 }
 0x81b   : > { %4059 = vmatpush3.bf16.msra.mxu0 %v4058_v23 }
 0x81c   : > { %4060 = vmatprep.subr.bf16.mxu0 %v4397_v0 }
 0x81f   : > { %4063 = vmatpush3.bf16.msk.msra.mxu0 %vm4900_vm7, %v4061_v27 }
 0x822   : > { %3781 = vmatmul.mubr.msk.f32.vlgmr.msra.gmra.mrb[46].mxu0 %vm1191_vm8, %v2529_v4 }
 0x8d9   : > { %v2616_v28 = vpop.f32.mrb[44].mxu0 }
 0x8da   : > { %v3751_v29 = vpop.f32.mrb[45].mxu0 }
 0x8f5   : > { %v2703_v30 = vpop.f32.mrb[46].mxu0 }
 0x8f6   : > { %v2707_v31 = vmax.f32 %v2616_v28, %v2703_v30  ;;  %v3782_v32 = vpop.f32.mrb[47].mxu0 }
 0x8f8   : > { %2709 = vst.msk [vmem:[%s473_s26] sm:$0xff] %vm2708_vm9, %v2707_v31 }
 0x8f9   : > { %4328 = shalt.err (!%p4325_p4)
}
 0x8fa   : > { %s4329_s14 = scalar_lea.hbm %s5406_s16, 128  ;;  %s4333_s26 = scalar_lea.hbm %s5496_s28, 256 }
 0x8fb   : > { %p4330_p9 = scmp.ne.s32.totalorder %s5406_s16, %s4329_s14  ;;  %p4334_p11 = scmp.lt.u32.totalorder %s5406_s16, %s5496_s28 }
 0x8fc   : > { %p4335_p13 = scmp.lt.u32.totalorder %s4333_s26, %s4329_s14  ;;  %p4337_p10 = scmp.lt.u32.totalorder %s4329_s14, %s5406_s16 }
 0x8fd   : > { %p4331_p0 = pnand %p4330_p9, %p4618_p5 }
 0x8fe   : > { %p4336_p6 = por %p4335_p13, %p4334_p11 }
 0x8ff   : > { %p4332_p8 = pneg %p4331_p0 }
 0x900   : > { %p4338_p3 = por %p4337_p10, %p4336_p6 }
 0x902   : > { %p4339_p7 = pnand %p4338_p3, %p4332_p8 }
 0x904   : > { %4342 = shalt.err (!%p4339_p7)
}
 0x905   : > { %4132 = dma.vmem_to_hbm [thread:$0]  (%p4618_p5), %s5408_s27, 128, %s5406_s16, %s2711_s8  }
 0x906 PF: > { %s5497_s10 = sld [smem:[#allocation15_spill]]  ;;  %s5498_s25 = sld [smem:[#allocation16_spill]] }
 0x907   : > { %p5500_p1 = scmp.ge.s32.totalorder %s4389_s24, 2 }
 0x90c   : > { %s2736_s18 = sand.u32 1, %s5497_s10   ;;  %p5499_p12 = scmp.ne.s32.totalorder %s5498_s25, 0 }
 0x90d   : > { %s2737_s17 = scalar_lea.sflag [#allocation4], %s2736_s18 }
 0x90e   : > { %p4149_p2 = pnand %p5500_p1, %p5499_p12 }
 0x910   : > { %4372 = dma.done.wait (!%p4149_p2), %s2737_s17, 128  }
 0x911   : > { %4374 = vsyncadd (!%p4149_p2), %s2737_s17, 4294967168  ;;  %s5501_s14 = smov %s4604_s21  ;;  %p27_p4 = scmp.ge.s32.totalorder %s4604_s21, 4  }
 0x912   : > { %s5502_s21 = smov %s4381_s22  ;;  %s5503_s22 = smov %s4385_s23 }
 0x913   : > { %s5504_s23 = smov %s4614_s11  ;;  %s5505_s24 = smov %s5501_s14 }
 0x914   :  { %29 = sbr.rel (!%p27_p4) target bundleno = 12 (0xc), region = 138 }
 0x91b   :  { %2742 = vsyncpa [#allocation3], 1 }
 0x91c   :  { %2744 = vsyncpa [#allocation3 + $0x1], 1 }
 0x91d   :  { %2745 = vsyncpa [#allocation6], 1 }
 0x91e   :  { %2746 = vsyncpa [#allocation9], 1 }
 0x91f   :  { %2747 = vsyncpa [#allocation4], 1 }
 0x920   :  { %2749 = vsyncpa [#allocation4 + $0x1], 1 }

</bundles_post_ra>
